<compile_context>
chip_gen: v6e
topology: v6e:2x2x1
jax: 0.10.0
libtpu: 0.0.40
codegen_flags: <defaults>
</compile_context>

<pallas_src>
import functools
import math

import jax
import jax.numpy as jnp
from jax.experimental import pallas as pl
from jax.experimental.pallas import tpu as pltpu


def mha_kernel(q_ref, k_ref, v_ref, mask_ref,
               wq_ref, bq_ref, wk_ref, bk_ref, wv_ref, bv_ref,
               woh_ref, bo_ref,
               o_ref,
               qh_ref, kh_ref, vh_ref,
               *, heads, d_k, compute_dtype):
    qi = pl.program_id(1)

    # ---- once per batch element (q-tile axis is innermost / "arbitrary"):
    # full-width K/V projections, then relayout into persistent head-major scratch.
    #   K scratch: (H, d_k, S)  lane-dense, MXU-native for QK^T.
    #   V scratch: (H, S, d_k)  MXU-native for PV (contraction over S).
    @pl.when(qi == 0)
    def _project_kv():
        k_slab = k_ref[0]                           # (S, D) compute_dtype
        v_slab = v_ref[0]
        kp = jnp.dot(k_slab, wk_ref[...],
                     preferred_element_type=jnp.float32) + bk_ref[...]   # (S, D) f32
        vp = jnp.dot(v_slab, wv_ref[...],
                     preferred_element_type=jnp.float32) + bv_ref[...]   # (S, D) f32
        # Relayout via per-head 2-D slices + full-slab stores (robust lowering,
        # amortized over all nq q tiles of this batch element).
        for h in range(heads):
            sl = slice(h * d_k, (h + 1) * d_k)
            kh_ref[h] = kp[:, sl].T.astype(compute_dtype)    # (d_k, S)
            vh_ref[h] = vp[:, sl].astype(compute_dtype)      # (S, d_k)

    # ---- every step: full-width Q projection (1/sqrt(d_k) already folded into
    # Wq/bq by the wrapper), then relayout to (H, tq, d_k) for head-batched MXU.
    qp = jnp.dot(q_ref[0], wq_ref[...],
                 preferred_element_type=jnp.float32) + bq_ref[...]       # (tq, D) f32
    for h in range(heads):
        qh_ref[h] = qp[:, h * d_k:(h + 1) * d_k].astype(compute_dtype)

    # ---- scores for all heads at once: (H, tq, S); rhs contraction on its
    # second-to-last dim (MXU-native (K, N) orientation).
    scores = jax.lax.dot_general(
        qh_ref[...], kh_ref[...],
        dimension_numbers=(((2,), (1,)), ((0,), (0,))),
        preferred_element_type=jnp.float32)

    # ---- mask: mask == 0 -> -1e9, computed once per tile, broadcast over heads.
    # TODO(synk): for purely causal / length-based masks, generate the mask
    #             in-kernel from iota instead of DMA-ing the O(S^2) int8 mask.
    masked = (mask_ref[0].astype(jnp.int32) == 0)[None, :, :]            # (1, tq, S)
    scores = jnp.where(masked, jnp.float32(-1e9), scores)

    # ---- numerically stable softmax over keys, f32 throughout.
    scores = scores - jnp.max(scores, axis=-1, keepdims=True)
    e = jnp.exp(scores)
    denom = jnp.sum(e, axis=-1, keepdims=True)
    probs = (e * pl.reciprocal(denom, approx=True)).astype(compute_dtype)

    # ---- PV for all heads at once: (H, tq, d_k)
    attn = jax.lax.dot_general(
        probs, vh_ref[...],
        dimension_numbers=(((2,), (1,)), ((0,), (0,))),
        preferred_element_type=jnp.float32).astype(compute_dtype)

    # ---- output projection: contract the head dim away against head-major Wo
    # (one batched dot_general + cross-head reduce). No concat scratch, no
    # d_k-wide masked partial stores.
    out_h = jax.lax.dot_general(
        attn, woh_ref[...],
        dimension_numbers=(((2,), (1,)), ((0,), (0,))),
        preferred_element_type=jnp.float32)                              # (H, tq, D)
    out = jnp.sum(out_h, axis=0) + bo_ref[...]                           # (tq, D)
    o_ref[0] = out.astype(o_ref.dtype)


def multi_head_attention(q, k, v, mask, params, heads,
                         *, block_q=None, compute_dtype=jnp.bfloat16):
    bs, S, D = q.shape
    assert D % heads == 0
    d_k = D // heads
    scale = 1.0 / math.sqrt(d_k)
    out_dtype = q.dtype

    wq, bq, wk, bk, wv, bv, wo, bo = params

    # Per-generation tuning from physical VMEM (v5e/v6e: 128 MiB; v7x: 64 MiB).
    phys_vmem = 128 * 1024 * 1024
    try:
        info = pltpu.get_tpu_info()
        phys_vmem = int(getattr(info, "vmem_capacity_bytes", phys_vmem))
    except Exception:
        pass
    vmem_limit = max(32 * 1024 * 1024,
                     min(100 * 1024 * 1024, int(phys_vmem * 0.8)))

    if block_q is None:
        block_q = min(S, 256 if phys_vmem >= 96 * 1024 * 1024 else 128)
        while block_q > 8 and S % block_q:
            block_q //= 2
        if S % block_q:
            block_q = S
    assert S % block_q == 0, "seq length must be divisible by the q-tile size"
    nq = S // block_q

    # Host-side weight prep (free, done once):
    #   * 1/sqrt(d_k) folded into Wq / bq.
    #   * Wo head-major (H, d_k, D) so the output projection is one batched
    #     contraction instead of a per-head concat.
    #   * MXU operands bf16; biases f32 (accumulation stays f32 in-kernel).
    wq_s = (wq * scale).astype(compute_dtype)
    bq_s = (bq * scale).reshape(1, D).astype(jnp.float32)
    wk_c = wk.astype(compute_dtype)
    bk_c = bk.reshape(1, D).astype(jnp.float32)
    wv_c = wv.astype(compute_dtype)
    bv_c = bv.reshape(1, D).astype(jnp.float32)
    woh = wo.reshape(heads, d_k, D).astype(compute_dtype)
    bo_c = bo.reshape(1, D).astype(jnp.float32)

    q_c = q.astype(compute_dtype)
    k_c = k.astype(compute_dtype)
    v_c = v.astype(compute_dtype)
    mask_i8 = (mask != 0).astype(jnp.int8)     # 4x less HBM traffic than an f32 mask

    kernel = functools.partial(mha_kernel, heads=heads, d_k=d_k,
                               compute_dtype=compute_dtype)

    q_spec = pl.BlockSpec((1, block_q, D), lambda b, i: (b, i, 0))
    kv_spec = pl.BlockSpec((1, S, D), lambda b, i: (b, 0, 0))   # re-DMA'd only when b changes
    mask_spec = pl.BlockSpec((1, block_q, S), lambda b, i: (b, i, 0))
    w_spec = pl.BlockSpec((D, D), lambda b, i: (0, 0))
    b_spec = pl.BlockSpec((1, D), lambda b, i: (0, 0))
    woh_spec = pl.BlockSpec((heads, d_k, D), lambda b, i: (0, 0, 0))
    out_spec = pl.BlockSpec((1, block_q, D), lambda b, i: (b, i, 0))

    return pl.pallas_call(
        kernel,
        out_shape=jax.ShapeDtypeStruct((bs, S, D), out_dtype),
        grid_spec=pltpu.PrefetchScalarGridSpec(
            num_scalar_prefetch=0,
            grid=(bs, nq),
            in_specs=[
                q_spec, kv_spec, kv_spec, mask_spec,
                w_spec, b_spec,      # Wq (pre-scaled), bq (pre-scaled)
                w_spec, b_spec,      # Wk, bk
                w_spec, b_spec,      # Wv, bv
                woh_spec, b_spec,    # Wo (head-major), bo
            ],
            out_specs=out_spec,
            scratch_shapes=[
                pltpu.VMEM((heads, block_q, d_k), compute_dtype),  # head-major Q tile
                pltpu.VMEM((heads, d_k, S), compute_dtype),        # head-major K (lane-dense)
                pltpu.VMEM((heads, S, d_k), compute_dtype),        # head-major V
            ],
        ),
        compiler_params=pltpu.CompilerParams(
            # Batch axis shards across TensorCores; q-tile axis stays sequential
            # because the K/V scratch is filled at qi == 0 and reused.
            # TODO(synk): on v7x, hoisting the K/V projection out of this kernel
            #             would let the q-tile axis be "parallel" as well.
            dimension_semantics=("parallel", "arbitrary"),
            vmem_limit_bytes=vmem_limit,
        ),
    )(q_c, k_c, v_c, mask_i8,
      wq_s, bq_s, wk_c, bk_c, wv_c, bv_c, woh, bo_c)


def reference_mha(q, k, v, mask, params, heads):
    """Pure-JAX f32 reference replicating the PyTorch forward (eval mode)."""
    bs, S, D = q.shape
    d_k = D // heads
    wq, bq, wk, bk, wv, bv, wo, bo = params
    qp = q @ wq + bq
    kp = k @ wk + bk
    vp = v @ wv + bv
    qh = qp.reshape(bs, S, heads, d_k).transpose(0, 2, 1, 3)
    kh = kp.reshape(bs, S, heads, d_k).transpose(0, 2, 1, 3)
    vh = vp.reshape(bs, S, heads, d_k).transpose(0, 2, 1, 3)
    scores = jnp.einsum("bhqd,bhkd->bhqk", qh, kh) / math.sqrt(d_k)
    scores = jnp.where(mask[:, None, :, :] == 0, -1000000000.0, scores)
    probs = jax.nn.softmax(scores, axis=-1)
    out = jnp.einsum("bhqk,bhkd->bhqd", probs, vh)
    concat = out.transpose(0, 2, 1, 3).reshape(bs, S, D)
    return concat @ wo + bo


if __name__ == "__main__":
    bs, seq, d_model, heads = 2, 8, 32, 4

    key = jax.random.PRNGKey(0)
    keys = jax.random.split(key, 12)

    q = jax.random.normal(keys[0], (bs, seq, d_model), dtype=jnp.float32)
    k = jax.random.normal(keys[1], (bs, seq, d_model), dtype=jnp.float32)
    v = jax.random.normal(keys[2], (bs, seq, d_model), dtype=jnp.float32)

    # Causal mask (1 = keep, 0 = masked), shape (bs, seq, seq).
    causal = jnp.tril(jnp.ones((seq, seq), dtype=jnp.float32))
    mask = jnp.broadcast_to(causal, (bs, seq, seq))

    # Deterministic parameter init: Linear weights in (in, out) layout, biases (out,).
    def init_linear(kw, kb):
        bound = 1.0 / math.sqrt(d_model)
        w = jax.random.uniform(kw, (d_model, d_model), jnp.float32, -bound, bound)
        b = jax.random.uniform(kb, (d_model,), jnp.float32, -bound, bound)
        return w, b

    wq, bq = init_linear(keys[3], keys[4])
    wk, bk = init_linear(keys[5], keys[6])
    wv, bv = init_linear(keys[7], keys[8])
    wo, bo = init_linear(keys[9], keys[10])
    params = (wq, bq, wk, bk, wv, bv, wo, bo)

    out = multi_head_attention(q, k, v, mask, params, heads)
    out = jax.block_until_ready(out)

    ref = reference_mha(q, k, v, mask, params, heads)
    assert out.shape == (bs, seq, d_model)

    # Kernel feeds the MXU bf16 operands (f32 accumulation), so compare against
    # the pure-f32 reference with a bf16-appropriate tolerance.
    max_err = float(jnp.max(jnp.abs(out - ref)))
    assert jnp.allclose(out, ref, atol=3e-2, rtol=3e-2), (
        f"mismatch vs JAX reference (max abs err = {max_err})")

    print("KERNEL_OK")
</pallas_src>

<mosaic_0001>
module attributes {stable_mosaic.version = 11 : i64} {
  func.func @mha_kernel(%arg0: i32, %arg1: i32, %arg2: memref<1x8x32xbf16, #tpu.memory_space<vmem>>, %arg3: memref<1x8x32xbf16, #tpu.memory_space<vmem>>, %arg4: memref<1x8x32xbf16, #tpu.memory_space<vmem>>, %arg5: memref<1x8x8xi8, #tpu.memory_space<vmem>>, %arg6: memref<32x32xbf16, #tpu.memory_space<vmem>>, %arg7: memref<1x32xf32, #tpu.memory_space<vmem>>, %arg8: memref<32x32xbf16, #tpu.memory_space<vmem>>, %arg9: memref<1x32xf32, #tpu.memory_space<vmem>>, %arg10: memref<32x32xbf16, #tpu.memory_space<vmem>>, %arg11: memref<1x32xf32, #tpu.memory_space<vmem>>, %arg12: memref<4x8x32xbf16, #tpu.memory_space<vmem>>, %arg13: memref<1x32xf32, #tpu.memory_space<vmem>>, %arg14: memref<1x8x32xf32, #tpu.memory_space<vmem>>, %arg15: memref<4x8x8xbf16, #tpu.memory_space<vmem>>, %arg16: memref<4x8x8xbf16, #tpu.memory_space<vmem>>, %arg17: memref<4x8x8xbf16, #tpu.memory_space<vmem>>) attributes {dimension_semantics = [#tpu.dimension_semantics<parallel>, #tpu.dimension_semantics<arbitrary>], iteration_bounds = array<i64: 2, 1>, scalar_prefetch = 0 : i64, scratch_operands = 3 : i64, tpu.core_type = #tpu.core_type<tc>, window_params = [{transform_indices = @transform_0, window_bounds = array<i64: 1, 8, 32>}, {transform_indices = @transform_1, window_bounds = array<i64: 1, 8, 32>}, {transform_indices = @transform_2, window_bounds = array<i64: 1, 8, 32>}, {transform_indices = @transform_3, window_bounds = array<i64: 1, 8, 8>}, {pipeline_mode = #tpu.pipeline_mode<synchronous>, transform_indices = @transform_4, window_bounds = array<i64: 32, 32>}, {pipeline_mode = #tpu.pipeline_mode<synchronous>, transform_indices = @transform_5, window_bounds = array<i64: 1, 32>}, {pipeline_mode = #tpu.pipeline_mode<synchronous>, transform_indices = @transform_6, window_bounds = array<i64: 32, 32>}, {pipeline_mode = #tpu.pipeline_mode<synchronous>, transform_indices = @transform_7, window_bounds = array<i64: 1, 32>}, {pipeline_mode = #tpu.pipeline_mode<synchronous>, transform_indices = @transform_8, window_bounds = array<i64: 32, 32>}, {pipeline_mode = #tpu.pipeline_mode<synchronous>, transform_indices = @transform_9, window_bounds = array<i64: 1, 32>}, {pipeline_mode = #tpu.pipeline_mode<synchronous>, transform_indices = @transform_10, window_bounds = array<i64: 4, 8, 32>}, {pipeline_mode = #tpu.pipeline_mode<synchronous>, transform_indices = @transform_11, window_bounds = array<i64: 1, 32>}, {transform_indices = @transform_12, window_bounds = array<i64: 1, 8, 32>}]} {
    %c0_i32 = arith.constant 0 : i32
    %0 = arith.cmpi eq, %arg1, %c0_i32 : i32
    %1 = arith.extui %0 : i1 to i32
    %c0_i32_0 = arith.constant 0 : i32
    %2 = arith.cmpi ne, %1, %c0_i32_0 : i32
    scf.if %2 {
      %c0_44 = arith.constant 0 : index
      %c0_45 = arith.constant 0 : index
      %c0_46 = arith.constant 0 : index
      %66 = vector.load %arg3[%c0_44, %c0_45, %c0_46] : memref<1x8x32xbf16, #tpu.memory_space<vmem>>, vector<1x8x32xbf16>
      %67 = vector.shape_cast %66 : vector<1x8x32xbf16> to vector<8x32xbf16>
      %c0_47 = arith.constant 0 : index
      %c0_48 = arith.constant 0 : index
      %c0_49 = arith.constant 0 : index
      %68 = vector.load %arg4[%c0_47, %c0_48, %c0_49] : memref<1x8x32xbf16, #tpu.memory_space<vmem>>, vector<1x8x32xbf16>
      %69 = vector.shape_cast %68 : vector<1x8x32xbf16> to vector<8x32xbf16>
      %c0_50 = arith.constant 0 : index
      %c0_51 = arith.constant 0 : index
      %70 = vector.load %arg8[%c0_50, %c0_51] : memref<32x32xbf16, #tpu.memory_space<vmem>>, vector<32x32xbf16>
      %cst_52 = arith.constant dense<0.000000e+00> : vector<8x32xf32>
      %71 = tpu.matmul %67, %70, %cst_52 {dimension_numbers = #tpu.dot_dimension_numbers<[1], [0], [0], [1], [0, 0, 1, 1], [], []>} : vector<8x32xbf16>, vector<32x32xbf16>, vector<8x32xf32> -> vector<8x32xf32>
      %c0_53 = arith.constant 0 : index
      %c0_54 = arith.constant 0 : index
      %72 = vector.load %arg9[%c0_53, %c0_54] : memref<1x32xf32, #tpu.memory_space<vmem>>, vector<1x32xf32>
      %73 = vector.broadcast %72 : vector<1x32xf32> to vector<8x32xf32>
      %74 = arith.addf %71, %73 : vector<8x32xf32>
      %c0_55 = arith.constant 0 : index
      %c0_56 = arith.constant 0 : index
      %75 = vector.load %arg10[%c0_55, %c0_56] : memref<32x32xbf16, #tpu.memory_space<vmem>>, vector<32x32xbf16>
      %cst_57 = arith.constant dense<0.000000e+00> : vector<8x32xf32>
      %76 = tpu.matmul %69, %75, %cst_57 {dimension_numbers = #tpu.dot_dimension_numbers<[1], [0], [0], [1], [0, 0, 1, 1], [], []>} : vector<8x32xbf16>, vector<32x32xbf16>, vector<8x32xf32> -> vector<8x32xf32>
      %c0_58 = arith.constant 0 : index
      %c0_59 = arith.constant 0 : index
      %77 = vector.load %arg11[%c0_58, %c0_59] : memref<1x32xf32, #tpu.memory_space<vmem>>, vector<1x32xf32>
      %78 = vector.broadcast %77 : vector<1x32xf32> to vector<8x32xf32>
      %79 = arith.addf %76, %78 : vector<8x32xf32>
      %80 = vector.extract_strided_slice %74 {offsets = [0, 0], sizes = [8, 8], strides = [1, 1]} : vector<8x32xf32> to vector<8x8xf32>
      %81 = tpu.transpose %80, [1, 0] : vector<8x8xf32> -> vector<8x8xf32>
      %82 = arith.truncf %81 : vector<8x8xf32> to vector<8x8xbf16>
      %c0_60 = arith.constant 0 : index
      %c0_61 = arith.constant 0 : index
      %c0_62 = arith.constant 0 : index
      %83 = vector.load %arg16[%c0_60, %c0_61, %c0_62] : memref<4x8x8xbf16, #tpu.memory_space<vmem>>, vector<1x8x8xbf16>
      %84 = vector.shape_cast %83 : vector<1x8x8xbf16> to vector<8x8xbf16>
      %85 = vector.shape_cast %82 : vector<8x8xbf16> to vector<1x8x8xbf16>
      tpu.vector_store %arg16[%c0_60, %c0_61, %c0_62], %85 {strides = array<i32>} : memref<4x8x8xbf16, #tpu.memory_space<vmem>>, vector<1x8x8xbf16>,
      %86 = vector.extract_strided_slice %79 {offsets = [0, 0], sizes = [8, 8], strides = [1, 1]} : vector<8x32xf32> to vector<8x8xf32>
      %87 = arith.truncf %86 : vector<8x8xf32> to vector<8x8xbf16>
      %c0_63 = arith.constant 0 : index
      %c0_64 = arith.constant 0 : index
      %c0_65 = arith.constant 0 : index
      %88 = vector.load %arg17[%c0_63, %c0_64, %c0_65] : memref<4x8x8xbf16, #tpu.memory_space<vmem>>, vector<1x8x8xbf16>
      %89 = vector.shape_cast %88 : vector<1x8x8xbf16> to vector<8x8xbf16>
      %90 = vector.shape_cast %87 : vector<8x8xbf16> to vector<1x8x8xbf16>
      tpu.vector_store %arg17[%c0_63, %c0_64, %c0_65], %90 {strides = array<i32>} : memref<4x8x8xbf16, #tpu.memory_space<vmem>>, vector<1x8x8xbf16>,
      %91 = vector.extract_strided_slice %74 {offsets = [0, 8], sizes = [8, 8], strides = [1, 1]} : vector<8x32xf32> to vector<8x8xf32>
      %92 = tpu.transpose %91, [1, 0] : vector<8x8xf32> -> vector<8x8xf32>
      %93 = arith.truncf %92 : vector<8x8xf32> to vector<8x8xbf16>
      %c1_66 = arith.constant 1 : index
      %c0_67 = arith.constant 0 : index
      %c0_68 = arith.constant 0 : index
      %94 = vector.load %arg16[%c1_66, %c0_67, %c0_68] : memref<4x8x8xbf16, #tpu.memory_space<vmem>>, vector<1x8x8xbf16>
      %95 = vector.shape_cast %94 : vector<1x8x8xbf16> to vector<8x8xbf16>
      %96 = vector.shape_cast %93 : vector<8x8xbf16> to vector<1x8x8xbf16>
      tpu.vector_store %arg16[%c1_66, %c0_67, %c0_68], %96 {strides = array<i32>} : memref<4x8x8xbf16, #tpu.memory_space<vmem>>, vector<1x8x8xbf16>,
      %97 = vector.extract_strided_slice %79 {offsets = [0, 8], sizes = [8, 8], strides = [1, 1]} : vector<8x32xf32> to vector<8x8xf32>
      %98 = arith.truncf %97 : vector<8x8xf32> to vector<8x8xbf16>
      %c1_69 = arith.constant 1 : index
      %c0_70 = arith.constant 0 : index
      %c0_71 = arith.constant 0 : index
      %99 = vector.load %arg17[%c1_69, %c0_70, %c0_71] : memref<4x8x8xbf16, #tpu.memory_space<vmem>>, vector<1x8x8xbf16>
      %100 = vector.shape_cast %99 : vector<1x8x8xbf16> to vector<8x8xbf16>
      %101 = vector.shape_cast %98 : vector<8x8xbf16> to vector<1x8x8xbf16>
      tpu.vector_store %arg17[%c1_69, %c0_70, %c0_71], %101 {strides = array<i32>} : memref<4x8x8xbf16, #tpu.memory_space<vmem>>, vector<1x8x8xbf16>,
      %102 = vector.extract_strided_slice %74 {offsets = [0, 16], sizes = [8, 8], strides = [1, 1]} : vector<8x32xf32> to vector<8x8xf32>
      %103 = tpu.transpose %102, [1, 0] : vector<8x8xf32> -> vector<8x8xf32>
      %104 = arith.truncf %103 : vector<8x8xf32> to vector<8x8xbf16>
      %c2_72 = arith.constant 2 : index
      %c0_73 = arith.constant 0 : index
      %c0_74 = arith.constant 0 : index
      %105 = vector.load %arg16[%c2_72, %c0_73, %c0_74] : memref<4x8x8xbf16, #tpu.memory_space<vmem>>, vector<1x8x8xbf16>
      %106 = vector.shape_cast %105 : vector<1x8x8xbf16> to vector<8x8xbf16>
      %107 = vector.shape_cast %104 : vector<8x8xbf16> to vector<1x8x8xbf16>
      tpu.vector_store %arg16[%c2_72, %c0_73, %c0_74], %107 {strides = array<i32>} : memref<4x8x8xbf16, #tpu.memory_space<vmem>>, vector<1x8x8xbf16>,
      %108 = vector.extract_strided_slice %79 {offsets = [0, 16], sizes = [8, 8], strides = [1, 1]} : vector<8x32xf32> to vector<8x8xf32>
      %109 = arith.truncf %108 : vector<8x8xf32> to vector<8x8xbf16>
      %c2_75 = arith.constant 2 : index
      %c0_76 = arith.constant 0 : index
      %c0_77 = arith.constant 0 : index
      %110 = vector.load %arg17[%c2_75, %c0_76, %c0_77] : memref<4x8x8xbf16, #tpu.memory_space<vmem>>, vector<1x8x8xbf16>
      %111 = vector.shape_cast %110 : vector<1x8x8xbf16> to vector<8x8xbf16>
      %112 = vector.shape_cast %109 : vector<8x8xbf16> to vector<1x8x8xbf16>
      tpu.vector_store %arg17[%c2_75, %c0_76, %c0_77], %112 {strides = array<i32>} : memref<4x8x8xbf16, #tpu.memory_space<vmem>>, vector<1x8x8xbf16>,
      %113 = vector.extract_strided_slice %74 {offsets = [0, 24], sizes = [8, 8], strides = [1, 1]} : vector<8x32xf32> to vector<8x8xf32>
      %114 = tpu.transpose %113, [1, 0] : vector<8x8xf32> -> vector<8x8xf32>
      %115 = arith.truncf %114 : vector<8x8xf32> to vector<8x8xbf16>
      %c3_78 = arith.constant 3 : index
      %c0_79 = arith.constant 0 : index
      %c0_80 = arith.constant 0 : index
      %116 = vector.load %arg16[%c3_78, %c0_79, %c0_80] : memref<4x8x8xbf16, #tpu.memory_space<vmem>>, vector<1x8x8xbf16>
      %117 = vector.shape_cast %116 : vector<1x8x8xbf16> to vector<8x8xbf16>
      %118 = vector.shape_cast %115 : vector<8x8xbf16> to vector<1x8x8xbf16>
      tpu.vector_store %arg16[%c3_78, %c0_79, %c0_80], %118 {strides = array<i32>} : memref<4x8x8xbf16, #tpu.memory_space<vmem>>, vector<1x8x8xbf16>,
      %119 = vector.extract_strided_slice %79 {offsets = [0, 24], sizes = [8, 8], strides = [1, 1]} : vector<8x32xf32> to vector<8x8xf32>
      %120 = arith.truncf %119 : vector<8x8xf32> to vector<8x8xbf16>
      %c3_81 = arith.constant 3 : index
      %c0_82 = arith.constant 0 : index
      %c0_83 = arith.constant 0 : index
      %121 = vector.load %arg17[%c3_81, %c0_82, %c0_83] : memref<4x8x8xbf16, #tpu.memory_space<vmem>>, vector<1x8x8xbf16>
      %122 = vector.shape_cast %121 : vector<1x8x8xbf16> to vector<8x8xbf16>
      %123 = vector.shape_cast %120 : vector<8x8xbf16> to vector<1x8x8xbf16>
      tpu.vector_store %arg17[%c3_81, %c0_82, %c0_83], %123 {strides = array<i32>} : memref<4x8x8xbf16, #tpu.memory_space<vmem>>, vector<1x8x8xbf16>,
    } else {
    }
    %c0 = arith.constant 0 : index
    %c0_1 = arith.constant 0 : index
    %c0_2 = arith.constant 0 : index
    %3 = vector.load %arg2[%c0, %c0_1, %c0_2] : memref<1x8x32xbf16, #tpu.memory_space<vmem>>, vector<1x8x32xbf16>
    %4 = vector.shape_cast %3 : vector<1x8x32xbf16> to vector<8x32xbf16>
    %c0_3 = arith.constant 0 : index
    %c0_4 = arith.constant 0 : index
    %5 = vector.load %arg6[%c0_3, %c0_4] : memref<32x32xbf16, #tpu.memory_space<vmem>>, vector<32x32xbf16>
    %cst = arith.constant dense<0.000000e+00> : vector<8x32xf32>
    %6 = tpu.matmul %4, %5, %cst {dimension_numbers = #tpu.dot_dimension_numbers<[1], [0], [0], [1], [0, 0, 1, 1], [], []>} : vector<8x32xbf16>, vector<32x32xbf16>, vector<8x32xf32> -> vector<8x32xf32>
    %c0_5 = arith.constant 0 : index
    %c0_6 = arith.constant 0 : index
    %7 = vector.load %arg7[%c0_5, %c0_6] : memref<1x32xf32, #tpu.memory_space<vmem>>, vector<1x32xf32>
    %8 = vector.broadcast %7 : vector<1x32xf32> to vector<8x32xf32>
    %9 = arith.addf %6, %8 : vector<8x32xf32>
    %10 = vector.extract_strided_slice %9 {offsets = [0, 0], sizes = [8, 8], strides = [1, 1]} : vector<8x32xf32> to vector<8x8xf32>
    %11 = arith.truncf %10 : vector<8x8xf32> to vector<8x8xbf16>
    %c0_7 = arith.constant 0 : index
    %c0_8 = arith.constant 0 : index
    %c0_9 = arith.constant 0 : index
    %12 = vector.load %arg15[%c0_7, %c0_8, %c0_9] : memref<4x8x8xbf16, #tpu.memory_space<vmem>>, vector<1x8x8xbf16>
    %13 = vector.shape_cast %12 : vector<1x8x8xbf16> to vector<8x8xbf16>
    %14 = vector.shape_cast %11 : vector<8x8xbf16> to vector<1x8x8xbf16>
    tpu.vector_store %arg15[%c0_7, %c0_8, %c0_9], %14 {strides = array<i32>} : memref<4x8x8xbf16, #tpu.memory_space<vmem>>, vector<1x8x8xbf16>,
    %15 = vector.extract_strided_slice %9 {offsets = [0, 8], sizes = [8, 8], strides = [1, 1]} : vector<8x32xf32> to vector<8x8xf32>
    %16 = arith.truncf %15 : vector<8x8xf32> to vector<8x8xbf16>
    %c1 = arith.constant 1 : index
    %c0_10 = arith.constant 0 : index
    %c0_11 = arith.constant 0 : index
    %17 = vector.load %arg15[%c1, %c0_10, %c0_11] : memref<4x8x8xbf16, #tpu.memory_space<vmem>>, vector<1x8x8xbf16>
    %18 = vector.shape_cast %17 : vector<1x8x8xbf16> to vector<8x8xbf16>
    %19 = vector.shape_cast %16 : vector<8x8xbf16> to vector<1x8x8xbf16>
    tpu.vector_store %arg15[%c1, %c0_10, %c0_11], %19 {strides = array<i32>} : memref<4x8x8xbf16, #tpu.memory_space<vmem>>, vector<1x8x8xbf16>,
    %20 = vector.extract_strided_slice %9 {offsets = [0, 16], sizes = [8, 8], strides = [1, 1]} : vector<8x32xf32> to vector<8x8xf32>
    %21 = arith.truncf %20 : vector<8x8xf32> to vector<8x8xbf16>
    %c2 = arith.constant 2 : index
    %c0_12 = arith.constant 0 : index
    %c0_13 = arith.constant 0 : index
    %22 = vector.load %arg15[%c2, %c0_12, %c0_13] : memref<4x8x8xbf16, #tpu.memory_space<vmem>>, vector<1x8x8xbf16>
    %23 = vector.shape_cast %22 : vector<1x8x8xbf16> to vector<8x8xbf16>
    %24 = vector.shape_cast %21 : vector<8x8xbf16> to vector<1x8x8xbf16>
    tpu.vector_store %arg15[%c2, %c0_12, %c0_13], %24 {strides = array<i32>} : memref<4x8x8xbf16, #tpu.memory_space<vmem>>, vector<1x8x8xbf16>,
    %25 = vector.extract_strided_slice %9 {offsets = [0, 24], sizes = [8, 8], strides = [1, 1]} : vector<8x32xf32> to vector<8x8xf32>
    %26 = arith.truncf %25 : vector<8x8xf32> to vector<8x8xbf16>
    %c3 = arith.constant 3 : index
    %c0_14 = arith.constant 0 : index
    %c0_15 = arith.constant 0 : index
    %27 = vector.load %arg15[%c3, %c0_14, %c0_15] : memref<4x8x8xbf16, #tpu.memory_space<vmem>>, vector<1x8x8xbf16>
    %28 = vector.shape_cast %27 : vector<1x8x8xbf16> to vector<8x8xbf16>
    %29 = vector.shape_cast %26 : vector<8x8xbf16> to vector<1x8x8xbf16>
    tpu.vector_store %arg15[%c3, %c0_14, %c0_15], %29 {strides = array<i32>} : memref<4x8x8xbf16, #tpu.memory_space<vmem>>, vector<1x8x8xbf16>,
    %c0_16 = arith.constant 0 : index
    %c0_17 = arith.constant 0 : index
    %c0_18 = arith.constant 0 : index
    %30 = vector.load %arg15[%c0_16, %c0_17, %c0_18] : memref<4x8x8xbf16, #tpu.memory_space<vmem>>, vector<4x8x8xbf16>
    %c0_19 = arith.constant 0 : index
    %c0_20 = arith.constant 0 : index
    %c0_21 = arith.constant 0 : index
    %31 = vector.load %arg16[%c0_19, %c0_20, %c0_21] : memref<4x8x8xbf16, #tpu.memory_space<vmem>>, vector<4x8x8xbf16>
    %cst_22 = arith.constant dense<0.000000e+00> : vector<4x8x8xf32>
    %32 = tpu.matmul %30, %31, %cst_22 {dimension_numbers = #tpu.dot_dimension_numbers<[2], [1], [1], [2], [0, 0, 0, 1, 1, 2], [0], [0]>} : vector<4x8x8xbf16>, vector<4x8x8xbf16>, vector<4x8x8xf32> -> vector<4x8x8xf32>
    %c0_23 = arith.constant 0 : index
    %c0_24 = arith.constant 0 : index
    %c0_25 = arith.constant 0 : index
    %33 = vector.load %arg5[%c0_23, %c0_24, %c0_25] : memref<1x8x8xi8, #tpu.memory_space<vmem>>, vector<1x8x8xi8>
    %34 = vector.shape_cast %33 : vector<1x8x8xi8> to vector<8x8xi8>
    %35 = arith.extsi %34 : vector<8x8xi8> to vector<8x8xi32>
    %c0_i32_26 = arith.constant 0 : i32
    %36 = vector.broadcast %c0_i32_26 : i32 to vector<8x8xi32>
    %37 = arith.cmpi eq, %35, %36 : vector<8x8xi32>
    %38 = vector.shape_cast %37 : vector<8x8xi1> to vector<1x8x8xi1>
    %cst_27 = arith.constant -1.000000e+09 : f32
    %39 = vector.shape_cast %38 : vector<1x8x8xi1> to vector<1x8x8xi1>
    %40 = vector.broadcast %39 : vector<1x8x8xi1> to vector<4x8x8xi1>
    %41 = vector.broadcast %cst_27 : f32 to vector<4x8x8xf32>
    %42 = arith.select %40, %41, %32 : vector<4x8x8xi1>, vector<4x8x8xf32>
    %cst_28 = arith.constant dense<0xFF800000> : vector<4x8xf32>
    %43 = vector.multi_reduction <maximumf>, %42, %cst_28 [2] : vector<4x8x8xf32> to vector<4x8xf32>
    %44 = vector.shape_cast %43 : vector<4x8xf32> to vector<4x8x1xf32>
    %45 = vector.broadcast %44 : vector<4x8x1xf32> to vector<4x8x8xf32>
    %46 = arith.subf %42, %45 : vector<4x8x8xf32>
    %47 = math.exp %46 : vector<4x8x8xf32>
    %cst_29 = arith.constant dense<0.000000e+00> : vector<4x8xf32>
    %48 = vector.multi_reduction <add>, %47, %cst_29 [2] : vector<4x8x8xf32> to vector<4x8xf32>
    %49 = vector.shape_cast %48 : vector<4x8xf32> to vector<4x8x1xf32>
    %50 = tpu.reciprocal %49 {approx = true} : vector<4x8x1xf32> -> vector<4x8x1xf32>
    %51 = vector.broadcast %50 : vector<4x8x1xf32> to vector<4x8x8xf32>
    %52 = arith.mulf %47, %51 : vector<4x8x8xf32>
    %53 = arith.truncf %52 : vector<4x8x8xf32> to vector<4x8x8xbf16>
    %c0_30 = arith.constant 0 : index
    %c0_31 = arith.constant 0 : index
    %c0_32 = arith.constant 0 : index
    %54 = vector.load %arg17[%c0_30, %c0_31, %c0_32] : memref<4x8x8xbf16, #tpu.memory_space<vmem>>, vector<4x8x8xbf16>
    %cst_33 = arith.constant dense<0.000000e+00> : vector<4x8x8xf32>
    %55 = tpu.matmul %53, %54, %cst_33 {dimension_numbers = #tpu.dot_dimension_numbers<[2], [1], [1], [2], [0, 0, 0, 1, 1, 2], [0], [0]>} : vector<4x8x8xbf16>, vector<4x8x8xbf16>, vector<4x8x8xf32> -> vector<4x8x8xf32>
    %56 = arith.truncf %55 : vector<4x8x8xf32> to vector<4x8x8xbf16>
    %c0_34 = arith.constant 0 : index
    %c0_35 = arith.constant 0 : index
    %c0_36 = arith.constant 0 : index
    %57 = vector.load %arg12[%c0_34, %c0_35, %c0_36] : memref<4x8x32xbf16, #tpu.memory_space<vmem>>, vector<4x8x32xbf16>
    %cst_37 = arith.constant dense<0.000000e+00> : vector<4x8x32xf32>
    %58 = tpu.matmul %56, %57, %cst_37 {dimension_numbers = #tpu.dot_dimension_numbers<[2], [1], [1], [2], [0, 0, 0, 1, 1, 2], [0], [0]>} : vector<4x8x8xbf16>, vector<4x8x32xbf16>, vector<4x8x32xf32> -> vector<4x8x32xf32>
    %cst_38 = arith.constant dense<0.000000e+00> : vector<8x32xf32>
    %59 = vector.multi_reduction <add>, %58, %cst_38 [0] : vector<4x8x32xf32> to vector<8x32xf32>
    %c0_39 = arith.constant 0 : index
    %c0_40 = arith.constant 0 : index
    %60 = vector.load %arg13[%c0_39, %c0_40] : memref<1x32xf32, #tpu.memory_space<vmem>>, vector<1x32xf32>
    %61 = vector.broadcast %60 : vector<1x32xf32> to vector<8x32xf32>
    %62 = arith.addf %59, %61 : vector<8x32xf32>
    %c0_41 = arith.constant 0 : index
    %c0_42 = arith.constant 0 : index
    %c0_43 = arith.constant 0 : index
    %63 = vector.load %arg14[%c0_41, %c0_42, %c0_43] : memref<1x8x32xf32, #tpu.memory_space<vmem>>, vector<1x8x32xf32>
    %64 = vector.shape_cast %63 : vector<1x8x32xf32> to vector<8x32xf32>
    %65 = vector.shape_cast %62 : vector<8x32xf32> to vector<1x8x32xf32>
    tpu.vector_store %arg14[%c0_41, %c0_42, %c0_43], %65 {strides = array<i32>} : memref<1x8x32xf32, #tpu.memory_space<vmem>>, vector<1x8x32xf32>,
    return
  }
  func.func @transform_0(%arg0: i32, %arg1: i32) -> (i32, i32, i32) {
    %c0_i32 = arith.constant 0 : i32
    %c0_i32_0 = arith.constant 0 : i32
    return %arg0, %arg1, %c0_i32 : i32, i32, i32
  }
  func.func @transform_1(%arg0: i32, %arg1: i32) -> (i32, i32, i32) {
    %c0_i32 = arith.constant 0 : i32
    %c0_i32_0 = arith.constant 0 : i32
    %c0_i32_1 = arith.constant 0 : i32
    return %arg0, %c0_i32, %c0_i32_0 : i32, i32, i32
  }
  func.func @transform_2(%arg0: i32, %arg1: i32) -> (i32, i32, i32) {
    %c0_i32 = arith.constant 0 : i32
    %c0_i32_0 = arith.constant 0 : i32
    %c0_i32_1 = arith.constant 0 : i32
    return %arg0, %c0_i32, %c0_i32_0 : i32, i32, i32
  }
  func.func @transform_3(%arg0: i32, %arg1: i32) -> (i32, i32, i32) {
    %c0_i32 = arith.constant 0 : i32
    %c0_i32_0 = arith.constant 0 : i32
    return %arg0, %arg1, %c0_i32 : i32, i32, i32
  }
  func.func @transform_4(%arg0: i32, %arg1: i32) -> (i32, i32) {
    %c0_i32 = arith.constant 0 : i32
    %c0_i32_0 = arith.constant 0 : i32
    %c0_i32_1 = arith.constant 0 : i32
    return %c0_i32, %c0_i32_0 : i32, i32
  }
  func.func @transform_5(%arg0: i32, %arg1: i32) -> (i32, i32) {
    %c0_i32 = arith.constant 0 : i32
    %c0_i32_0 = arith.constant 0 : i32
    %c0_i32_1 = arith.constant 0 : i32
    return %c0_i32, %c0_i32_0 : i32, i32
  }
  func.func @transform_6(%arg0: i32, %arg1: i32) -> (i32, i32) {
    %c0_i32 = arith.constant 0 : i32
    %c0_i32_0 = arith.constant 0 : i32
    %c0_i32_1 = arith.constant 0 : i32
    return %c0_i32, %c0_i32_0 : i32, i32
  }
  func.func @transform_7(%arg0: i32, %arg1: i32) -> (i32, i32) {
    %c0_i32 = arith.constant 0 : i32
    %c0_i32_0 = arith.constant 0 : i32
    %c0_i32_1 = arith.constant 0 : i32
    return %c0_i32, %c0_i32_0 : i32, i32
  }
  func.func @transform_8(%arg0: i32, %arg1: i32) -> (i32, i32) {
    %c0_i32 = arith.constant 0 : i32
    %c0_i32_0 = arith.constant 0 : i32
    %c0_i32_1 = arith.constant 0 : i32
    return %c0_i32, %c0_i32_0 : i32, i32
  }
  func.func @transform_9(%arg0: i32, %arg1: i32) -> (i32, i32) {
    %c0_i32 = arith.constant 0 : i32
    %c0_i32_0 = arith.constant 0 : i32
    %c0_i32_1 = arith.constant 0 : i32
    return %c0_i32, %c0_i32_0 : i32, i32
  }
  func.func @transform_10(%arg0: i32, %arg1: i32) -> (i32, i32, i32) {
    %c0_i32 = arith.constant 0 : i32
    %c0_i32_0 = arith.constant 0 : i32
    %c0_i32_1 = arith.constant 0 : i32
    %c0_i32_2 = arith.constant 0 : i32
    return %c0_i32, %c0_i32_0, %c0_i32_1 : i32, i32, i32
  }
  func.func @transform_11(%arg0: i32, %arg1: i32) -> (i32, i32) {
    %c0_i32 = arith.constant 0 : i32
    %c0_i32_0 = arith.constant 0 : i32
    %c0_i32_1 = arith.constant 0 : i32
    return %c0_i32, %c0_i32_0 : i32, i32
  }
  func.func @transform_12(%arg0: i32, %arg1: i32) -> (i32, i32, i32) {
    %c0_i32 = arith.constant 0 : i32
    %c0_i32_0 = arith.constant 0 : i32
    return %arg0, %arg1, %c0_i32 : i32, i32, i32
  }
}

</mosaic_0001>

<bundles_post_ra>
// kernel: tpu_custom_call.1
= control target key start
LH: loop header
LB: loop body
LE: loop exit
PB: predicated region body
PF: predicated region fallthrough
CT: control target
= control target key end

     0   :  { %s3023_s0 = inlined_call_operand.hbm [shape: bf16[2,8,32], index: 0, kind: input, shape index: {}]   ;;  %s3024_s1 = inlined_call_operand.hbm [shape: bf16[2,8,32], index: 1, kind: input, shape index: {}]   ;;  %s3025_s2 = inlined_call_operand.hbm [shape: bf16[2,8,32], index: 2, kind: input, shape index: {}]   ;;  %s3026_s3 = inlined_call_operand.hbm [shape: s8[2,8,8], index: 3, kind: input, shape index: {}]   ;;  %s3027_s4 = inlined_call_operand.hbm [shape: bf16[32,32], index: 4, kind: input, shape index: {}]   ;;  %s3028_s5 = inlined_call_operand.vmem [shape: f32[1,32], index: 5, kind: input, shape index: {}]   ;;  %s3029_s6 = inlined_call_operand.hbm [shape: bf16[32,32], index: 6, kind: input, shape index: {}]   ;;  %s3030_s7 = inlined_call_operand.vmem [shape: f32[1,32], index: 7, kind: input, shape index: {}]   ;;  %s3031_s8 = inlined_call_operand.hbm [shape: bf16[32,32], index: 8, kind: input, shape index: {}]   ;;  %s3032_s9 = inlined_call_operand.hbm [shape: f32[1,32], index: 9, kind: input, shape index: {}]   ;;  %s3033_s10 = inlined_call_operand.vmem [shape: bf16[4,8,32], index: 10, kind: input, shape index: {}]   ;;  %s3034_s11 = inlined_call_operand.vmem [shape: f32[1,32], index: 11, kind: input, shape index: {}]   ;;  %s3035_s12 = inlined_call_operand.hbm [shape: f32[2,8,32], index: 12, kind: output, shape index: {}]  }
   0x1   :  { %3049 = sst [smem:[#allocation34_spill]] %s3023_s0 }
   0x2   :  { %3050 = sst [smem:[#allocation35_spill]] %s3024_s1 }
   0x3   :  { %3051 = sst [smem:[#allocation36_spill]] %s3027_s4 }
   0x4   :  { %3052 = sst [smem:[#allocation37_spill]] %s3029_s6 }
   0x5   :  { %3053 = sst [smem:[#allocation38_spill]] %s3034_s11 }
   0x6   :  { %3054 = sst [smem:[#allocation39_spill]] %s3035_s12 }
   0x7   :  { %17 = vsyncpa [#allocation6], 0 }
   0x8   :  { %19 = vsyncpa [#allocation6 + $0x1], 0 }
   0x9   :  { %20 = vsyncpa [#allocation9], 0 }
   0xa   :  { %22 = vsyncpa [#allocation9 + $0x1], 0 }
   0xb   :  { %23 = vsyncpa [#allocation12], 0 }
   0xc   :  { %25 = vsyncpa [#allocation12 + $0x1], 0 }
   0xd   :  { %26 = vsyncpa [#allocation15], 0 }
   0xe   :  { %27 = vsyncpa [#allocation18], 0 }
   0xf   :  { %28 = vsyncpa [#allocation7], 0 }
  0x10   :  { %30 = vsyncpa [#allocation7 + $0x1], 0  ;;  %s2593_s21 = smov 0   ;;  %s2595_s22 = smov 0  }
  0x11   :  { %s2597_s23 = smov 0   ;;  %s2599_s24 = smov 0  }
  0x12   :  { %s2601_s25 = smov 0   ;;  %s2603_s26 = smov 0  }
  0x13 LB: > { %3055 = sst [smem:[#allocation27_spill]] %s2490_s21  ;;  %s2624_s27 = sadd.s32 4294967295, %s2510_s26   ;;  %s2510_s26 = sphi %s2603_s26, %s36_s26   ;;  %s2506_s25 = sphi %s2601_s25, %s3102_s25   ;;  %s2502_s24 = sphi %s2599_s24, %s3101_s24   ;;  %s2498_s23 = sphi %s2597_s23, %s3097_s23   ;;  %s2494_s22 = sphi %s2595_s22, %s3100_s22   ;;  %s2490_s21 = sphi %s2593_s21, %s3099_s21  }
  0x14   : > { %3056 = sst [smem:[#allocation28_spill]] %s2498_s23  ;;  %s1860_s28 = sadd.s32 4294967294, %s2510_s26  }
  0x15   : > { %3057 = sst [smem:[#allocation29_spill]] %s2502_s24  ;;  %p70_p0 = scmp.ne.s32.totalorder %s2494_s22, %s2490_s21 }
  0x16   : > { %p3045_p1 = scmp.eq.s32.totalorder %s2624_s27, 0  ;;  %p344_p2 = scmp.eq.s32.totalorder %s2624_s27, 1 }
  0x17   : > { %p350_p3 = scmp.eq.s32.totalorder %s1860_s28, 1  ;;  %p1861_p5 = scmp.ge.s32.totalorder %s2510_s26, 1 }
  0x18   : > { %p2633_p4 = por %p3045_p1, %p70_p0  ;;  %p357_p7 = scmp.lt.s32.totalorder %s2510_s26, 3 }
  0x19   : > { %p2638_p6 = por %p350_p3, %p70_p0  ;;  %s2512_s14 = smov [#allocation13]  }
  0x1a   : > { %p2643_p8 = pnand %p1861_p5, %p357_p7  ;;  %s369_s15 = sshll.u32 %s2512_s14, 4  ;;  %s370_s15 = int_to_ptr.vmem [resolvable:$true] %s369_s15 }
  0x1b   : > { %s3059_s30 = scalar_select %p2638_p6, 1, 0 }
  0x1c   : > { %p2073_p9 = pneg %p2643_p8  ;;  %s2513_s17 = smov [#allocation14]  }
  0x1d   : > { %3060 = sst [smem:[#allocation30_spill]] %s3059_s30  ;;  %s385_s18 = sshll.u32 %s2513_s17, 4  ;;  %s386_s18 = int_to_ptr.vmem [resolvable:$true] %s385_s18 }
  0x1e   : > { %p2652_p11 = pnand %p2073_p9, %p3045_p1  ;;  %s2205_s19 = scalar_lea.vmem %s370_s15, 256 }
  0x1f   : > { %p2206_p13 = scmp.ne.s32.totalorder %s370_s15, %s2205_s19  ;;  %p2213_p5 = scmp.lt.s32.totalorder %s370_s15, %s370_s15 }
  0x20   : > { %p3046_p12 = pneg %p2652_p11  ;;  %p2214_p7 = scmp.lt.s32.totalorder %s2205_s19, %s2205_s19 }
  0x22   : > { %p2208_p0 = pnand %p2206_p13, %p3046_p12  ;;  %p2215_p10 = por %p2214_p7, %p2213_p5 }
  0x24   : > { %p2209_p3 = pneg %p2208_p0 }
  0x26   : > { %p2216_p9 = pnand %p2215_p10, %p2209_p3 }
  0x28   : > { %2219 = shalt.err (!%p2216_p9)
}
  0x29   : > { %s3038_s20 = smov 64   ;;  %s3039_s28 = smov 4  }
  0x2a   : > { %s3063_s4 = sld [smem:[#allocation36_spill]]  ;;  %s2231_s30 = scalar_lea.vmem %s386_s18, 256 }
  0x2b   : > { %p2232_p13 = scmp.ne.s32.totalorder %s386_s18, %s2231_s30  ;;  %p2239_p10 = scmp.lt.s32.totalorder %s386_s18, %s386_s18 }
  0x2c   : > { %p2240_p3 = scmp.lt.s32.totalorder %s2231_s30, %s2231_s30 }
  0x2d   : > { %p2234_p0 = pnand %p2232_p13, %p3046_p12 }
  0x2e   : > { %p2241_p7 = por %p2240_p3, %p2239_p10 }
  0x2f   : > { %p2235_p5 = pneg %p2234_p0 }
  0x30   : > { %2076 = dma.hbm_to_vmem [thread:$0]  (!%p2652_p11), %s3063_s4, 256, %s370_s15, [#allocation12], %s3038_s20, %s3038_s20, %s3039_s28  }
  0x31   : > { %p2242_p9 = pnand %p2241_p7, %p2235_p5 }
  0x33   : > { %2245 = shalt.err (!%p2242_p9)
}
  0x34   : > { %s3064_s6 = sld [smem:[#allocation37_spill]]  ;;  %s48_s30 = sadd.s32 1, %s2506_s25 }
  0x35   : > { %s57_s15 = sadd.s32 1, %s2498_s23  ;;  %p50_p13 = scmp.ge.s32.totalorder %s48_s30, 2 }
  0x36   : > { %p64_p0 = scmp.ne.s32.totalorder %s2498_s23, %s2494_s22  ;;  %p65_p5 = scmp.eq.s32.totalorder %s2510_s26, 0 }
  0x37   : > { %p2107_p10 = scmp.lt.s32.totalorder %s2510_s26, 2  ;;  %s3104_s30 = smov (%p50_p13, %s48_s30), 0 }
  0x38   : > { %3065 = sst [smem:[#allocation31_spill]] %s3104_s30  ;;  %p66_p3 = por %p65_p5, %p64_p0 }
  0x39   : > { %p2690_p7 = por %p344_p2, %p64_p0  ;;  %s52_s14 = ssub.s32 %s2506_s25, %s3104_s30 }
  0x3a   : > { %2079 = dma.hbm_to_vmem [thread:$0]  (!%p2652_p11), %s3064_s6, 256, %s386_s18, [#allocation15], %s3038_s20, %s3038_s20, %s3039_s28  }
  0x3b   : > { %s3066_s21 = scalar_select %p2690_p7, 1, 0 }
  0x3c   : > { %s2697_s18 = sand.u32 1, %s2498_s23   ;;  %p55_p9 = scmp.eq.s32.totalorder %s52_s14, 0 }
  0x3d   : > { %3067 = sst [smem:[#allocation32_spill]] %s3066_s21  ;;  %s2700_s17 = sshll.u32 %s2697_s18, 2 }
  0x3e   : > { %s2703_s19 = sshll.u32 %s2506_s25, 6  ;;  %p2705_p13 = pnand %p2107_p10, %p66_p3 }
  0x3f   : > { %s2710_s28 = scalar_select %p55_p9, %s2498_s23, %s57_s15  }
  0x40   : > { %s3047_s4 = sand.u32 1, %s2510_s26   ;;  %s3070_s1 = sld [smem:[#allocation35_spill]] }
  0x41   : > { %3069 = sst [smem:[#allocation33_spill]] %s2710_s28  ;;  %s455_s14 = scalar_lea.vmem [#allocation8], %s2700_s17 }
  0x42   : > { %s462_s21 = sshll.u32 %s455_s14, 4  ;;  %s2720_s11 = scalar_lea.sflag [#allocation9], %s3047_s4  ;;  %s463_s21 = int_to_ptr.vmem [resolvable:$true] %s462_s21 }
  0x43   : > { %p3048_p2 = pneg %p2705_p13  ;;  %s2259_s24 = scalar_lea.vmem %s463_s21, 64 }
  0x44   : > { %p2260_p0 = scmp.ne.s32.totalorder %s463_s21, %s2259_s24  ;;  %s2516_s15 = smov [#allocation8]  }
  0x45   : > { %s2264_s28 = sshll.u32 %s2516_s15, 4  ;;  %s2265_s28 = int_to_ptr.vmem [resolvable:$false] %s2264_s28 }
  0x46   : > { %s460_s12 = scalar_lea.hbm %s3070_s1, %s2703_s19  ;;  %p2262_p5 = pnand %p2260_p0, %p3048_p2 }
  0x47   : > { %s2266_s23 = scalar_lea.vmem %s2265_s28, 128  ;;  %p2267_p3 = scmp.lt.s32.totalorder %s463_s21, %s2265_s28 }
  0x48   : > { %p2263_p10 = pneg %p2262_p5  ;;  %p2268_p9 = scmp.lt.s32.totalorder %s2266_s23, %s2259_s24 }
  0x4a   : > { %p2269_p1 = por %p2268_p9, %p2267_p3 }
  0x4c   : > { %p2270_p12 = pnand %p2269_p1, %p2263_p10 }
  0x4e   : > { %2273 = shalt.err (!%p2270_p12)
}
  0x4f   : > { %2092 = dma.hbm_to_vmem [thread:$0]  (!%p2705_p13), %s460_s12, 64, %s463_s21, %s2720_s11  }
  0x50   : > { %s2517_s6 = smov [#allocation16]   ;;  %s2518_s14 = smov [#allocation17]  }
  0x51   : > { %s401_s30 = sshll.u32 %s2517_s6, 4  ;;  %s415_s4 = sshll.u32 %s2518_s14, 4  ;;  %s402_s30 = int_to_ptr.vmem [resolvable:$true] %s401_s30  ;;  %s416_s4 = int_to_ptr.vmem [resolvable:$true] %s415_s4 }
  0x52   : > { %s2285_s1 = scalar_lea.vmem %s402_s30, 256  ;;  %p3071_p5 = pneg %p2652_p11 }
  0x53   : > { %p2286_p0 = scmp.ne.s32.totalorder %s402_s30, %s2285_s1  ;;  %p2293_p3 = scmp.lt.s32.totalorder %s402_s30, %s402_s30 }
  0x54   : > { %p2294_p1 = scmp.lt.s32.totalorder %s2285_s1, %s2285_s1 }
  0x55   : > { %p2288_p2 = pnand %p2286_p0, %p3071_p5 }
  0x56   : > { %p2295_p12 = por %p2294_p1, %p2293_p3 }
  0x57   : > { %p2289_p6 = pneg %p2288_p2 }
  0x59   : > { %p2296_p10 = pnand %p2295_p12, %p2289_p6 }
  0x5b   : > { %2299 = shalt.err (!%p2296_p10)
}
  0x5c   : > { %s3072_s12 = smov 4   ;;  %s3073_s23 = smov 64  }
  0x5d   : > { %2082 = dma.hbm_to_vmem [thread:$0]  (!%p2652_p11), %s3031_s8, 256, %s402_s30, [#allocation15], %s3073_s23, %s3073_s23, %s3072_s12  }
  0x5e   : > { %s2311_s21 = scalar_lea.vmem %s416_s4, 16  ;;  %p3074_p0 = pmov %p3071_p5 }
  0x5f   : > { %p2312_p9 = scmp.ne.s32.totalorder %s416_s4, %s2311_s21  ;;  %s2318_s1 = scalar_lea.vmem %s416_s4, 32 }
  0x60   : > { %p2319_p3 = scmp.lt.s32.totalorder %s416_s4, %s416_s4  ;;  %p2320_p6 = scmp.lt.s32.totalorder %s2318_s1, %s2311_s21 }
  0x61   : > { %p2314_p2 = pnand %p2312_p9, %p3074_p0 }
  0x62   : > { %p2321_p1 = por %p2320_p6, %p2319_p3 }
  0x63   : > { %p2315_p5 = pneg %p2314_p2 }
  0x65   : > { %p2322_p12 = pnand %p2321_p1, %p2315_p5 }
  0x67   : > { %2325 = shalt.err (!%p2322_p12)
}
  0x68   : > { %2085 = dma.hbm_to_vmem [thread:$0]  (!%p2652_p11), %s3032_s9, 16, %s416_s4, [#allocation18]  }
  0x69   : > { %s3075_s0 = sld [smem:[#allocation34_spill]]  ;;  %s436_s23 = scalar_lea.vmem [#allocation5], %s2700_s17 }
  0x6a   : > { %s444_s24 = sshll.u32 %s436_s23, 4  ;;  %s433_s28 = scalar_lea.sflag [#allocation6], %s2697_s18  ;;  %s445_s24 = int_to_ptr.vmem [resolvable:$true] %s444_s24 }
  0x6b   : > { %s2339_s21 = scalar_lea.vmem %s445_s24, 64  ;;  %p3076_p9 = pneg %p2705_p13 }
  0x6c   : > { %p2340_p10 = scmp.ne.s32.totalorder %s445_s24, %s2339_s21  ;;  %s2519_s16 = smov [#allocation5]  }
  0x6d   : > { %s2344_s1 = sshll.u32 %s2519_s16, 4  ;;  %s2345_s1 = int_to_ptr.vmem [resolvable:$false] %s2344_s1 }
  0x6e   : > { %p2342_p0 = pnand %p2340_p10, %p3076_p9  ;;  %s2346_s15 = scalar_lea.vmem %s2345_s1, 128 }
  0x6f   : > { %s442_s12 = scalar_lea.hbm %s3075_s0, %s2703_s19  ;;  %p2347_p5 = scmp.lt.s32.totalorder %s445_s24, %s2345_s1 }
  0x70   : > { %p2343_p2 = pneg %p2342_p0  ;;  %p2348_p11 = scmp.lt.s32.totalorder %s2346_s15, %s2339_s21 }
  0x72   : > { %p2349_p3 = por %p2348_p11, %p2347_p5 }
  0x74   : > { %p2350_p6 = pnand %p2349_p3, %p2343_p2 }
  0x76   : > { %2353 = shalt.err (!%p2350_p6)
}
  0x77   : > { %2089 = dma.hbm_to_vmem [thread:$0]  (!%p2705_p13), %s442_s12, 64, %s445_s24, %s433_s28  }
  0x78   : > { %s478_s30 = scalar_lea.hbm %s3025_s2, %s2703_s19  ;;  %s473_s14 = scalar_lea.vmem [#allocation10], %s2700_s17 }
  0x79   : > { %s480_s23 = sshll.u32 %s473_s14, 4  ;;  %s1873_s16 = sshll.u32 %s2697_s18, 1  ;;  %s481_s23 = int_to_ptr.vmem [resolvable:$true] %s480_s23 }
  0x7a   : > { %s2367_s1 = scalar_lea.vmem %s481_s23, 64  ;;  %p3077_p12 = pmov %p3076_p9 }
  0x7b   : > { %p2368_p1 = scmp.ne.s32.totalorder %s481_s23, %s2367_s1  ;;  %s2520_s21 = smov [#allocation10]  }
  0x7c   : > { %s2372_s15 = sshll.u32 %s2520_s21, 4  ;;  %s2373_s15 = int_to_ptr.vmem [resolvable:$false] %s2372_s15 }
  0x7d   : > { %p2370_p10 = pnand %p2368_p1, %p3077_p12  ;;  %s2374_s0 = scalar_lea.vmem %s2373_s15, 128 }
  0x7e   : > { %p2375_p0 = scmp.lt.s32.totalorder %s481_s23, %s2373_s15  ;;  %p2376_p2 = scmp.lt.s32.totalorder %s2374_s0, %s2367_s1 }
  0x7f   : > { %p2371_p9 = pneg %p2370_p10 }
  0x80   : > { %p2377_p5 = por %p2376_p2, %p2375_p0 }
  0x82   : > { %p2378_p11 = pnand %p2377_p5, %p2371_p9 }
  0x84   : > { %2381 = shalt.err (!%p2378_p11)
}
  0x85   : > { %2095 = dma.hbm_to_vmem [thread:$0]  (!%p2705_p13), %s478_s30, 64, %s481_s23, %s2720_s11  }
  0x86   : > { %s1874_s18 = sshll.u32 %s2506_s25, 5  ;;  %s491_s24 = scalar_lea.vmem [#allocation11], %s1873_s16 }
  0x87   : > { %s497_s12 = scalar_lea.hbm %s3026_s3, %s1874_s18  ;;  %s499_s28 = sshll.u32 %s491_s24, 4  ;;  %s500_s28 = int_to_ptr.vmem [resolvable:$true] %s499_s28 }
  0x88   : > { %s3078_s4 = sand.u32 1, %s2510_s26   ;;  %s2395_s6 = scalar_lea.vmem %s500_s28, 32 }
  0x89   : > { %s488_s0 = scalar_lea.sflag [#allocation12], %s3078_s4  ;;  %p2396_p3 = scmp.ne.s32.totalorder %s500_s28, %s2395_s6 }
  0x8a   : > { %p3079_p6 = pmov %p3077_p12  ;;  %s2521_s14 = smov [#allocation11]  }
  0x8b   : > { %s2400_s1 = sshll.u32 %s2521_s14, 4  ;;  %s2401_s1 = int_to_ptr.vmem [resolvable:$false] %s2400_s1 }
  0x8c   : > { %p2398_p1 = pnand %p2396_p3, %p3079_p6  ;;  %s2402_s11 = scalar_lea.vmem %s2401_s1, 64 }
  0x8d   : > { %p2403_p10 = scmp.lt.s32.totalorder %s500_s28, %s2401_s1  ;;  %p2404_p9 = scmp.lt.s32.totalorder %s2402_s11, %s2395_s6 }
  0x8e   : > { %p2399_p12 = pneg %p2398_p1 }
  0x8f   : > { %p2405_p0 = por %p2404_p9, %p2403_p10 }
  0x91   : > { %p2406_p2 = pnand %p2405_p0, %p2399_p12 }
  0x93   : > { %2409 = shalt.err (!%p2406_p2)
}
  0x94   : > { %2098 = dma.hbm_to_vmem [thread:$0]  (!%p2705_p13), %s497_s12, 32, %s500_s28, %s488_s0  }
  0x95   : > { %508 = sbr.rel (%p2643_p8) target bundleno = 1551 (0x60f), region = 68  ;;  %s2786_s30 = sand.u32 (!%p2643_p8), 1, %s2494_s22  }
  0x96   : > { %s2789_s23 = sshll.u32 (!%p2643_p8), %s2786_s30, 2  ;;  %s511_s16 = scalar_lea.sflag (!%p2643_p8), [#allocation6], %s2786_s30 }
  0x97   : > { %s514_s21 = scalar_lea.vmem (!%p2643_p8), [#allocation5], %s2789_s23 }
  0x9a   : > { %2461 = dma.done.wait (%p2633_p4), %s511_s16, 64  }
  0x9b   : > { %2463 = vsyncadd (%p2633_p4), %s511_s16, 4294967232  ;;  %s519_s13 = sand.u32 1, %s2624_s27   ;;  %s523_s15 = scalar_lea.vmem [#allocation8], %s2789_s23 }
  0x9c   : > { %s520_s20 = scalar_lea.sflag [#allocation9], %s519_s13 }
  0x9d   : > { %2465 = dma.done.wait (%p2633_p4), %s520_s20, 128  }
  0x9e   : > { %2467 = vsyncadd (%p2633_p4), %s520_s20, 4294967168  ;;  %s1879_s18 = sshll.u32 %s2786_s30, 1  ;;  %s532_s17 = scalar_lea.vmem [#allocation10], %s2789_s23 }
  0x9f   : > { %s538_s19 = scalar_lea.sflag [#allocation12], %s519_s13  ;;  %s2805_s12 = scalar_lea.vmem [#allocation11], %s1879_s18 }
  0xa0   : > { %2469 = dma.done.wait (%p2633_p4), %s538_s19, 32  }
  0xa1   : > { %2471 = vsyncadd (%p2633_p4), %s538_s19, 4294967264  ;;  %p3080_p8 = scmp.eq.s32.totalorder %s2624_s27, 0 }
  0xa3   : > { %2473 = dma.done.wait (%p3080_p8), [#allocation12], 256   ;;  %p3081_p13 = pmov %p3080_p8 }
  0xa4   : > { %p3082_p5 = pmov %p3080_p8 }
  0xa5   : > { %2475 = vsyncadd (%p3081_p13), [#allocation12], 4294967040 }
  0xa6   : > { %2477 = dma.done.wait (%p3082_p5), [#allocation15], 512   ;;  %p3083_p11 = pmov %p3082_p5 }
  0xa7   : > { %p3084_p3 = pmov %p3082_p5 }
  0xa8   : > { %2479 = vsyncadd (%p3083_p11), [#allocation15], 4294966784 }
  0xa9   : > { %2481 = dma.done.wait (%p3084_p3), [#allocation18], 16   ;;  %p3085_p6 = pmov %p3084_p3 }
  0xaa   : > { %v2522_v0 = vmov 0.0   ;;  %vm2523_vm0 = vmmov 0   ;;  %v2172_v1 = vld [vmem:[#allocation14 + $0x8] sm:$0xff]   ;;  %v2173_v2 = vld [vmem:[#allocation14] sm:$0xff]   ;;  %vm643_vm1 = vcmask 261120   ;;  %v2174_v4 = vld [vmem:[#allocation13 + $0x8] sm:$0xff]  }
  0xab   : > { %2483 = vsyncadd (%p3085_p6), [#allocation18], 4294967280  ;;  %1951 = vmatprep.subr.bf16.mxu0 %v2522_v0  ;;  %1955 = vmatprep.mubr.msk.bf16.mxu0 %vm2523_vm0, %v2522_v0  ;;  %v618_v3 = vld [vmem:[%s523_s15] sm:$0xf]  ;;  %v2175_v5 = vld [vmem:[#allocation13] sm:$0xff]   ;;  %s2524_s24 = smov 104  }
  0xac   : > { %1959 = vmatprep.subr.bf16.mxu1 %v2522_v0  ;;  %1963 = vmatprep.mubr.msk.bf16.mxu1 %vm2523_vm0, %v2522_v0  ;;  %v923_v6 = vld [vmem:[%s514_s21] sm:$0xf]  ;;  %s2525_s28 = smov 120   ;;  %s2526_s6 = smov 112   ;;  %vm786_vm2 = vcmask 60416   ;;  %vm1024_vm3 = vcmask 1043456  }
  0xad   : > { %1952 = vmatpush3.bf16.msra.mxu0 %v2172_v1  ;;  %v1885_v7 = vld [vmem:[%s3030_s7] ss:$0 sm:$0xff]  ;;  %v2176_v8 = vld [vmem:[#allocation16 + $0x8] sm:$0xff]   ;;  %v619_v22 = vld [vmem:[%s532_s17] sm:$0xf]  ;;  %vm1020_vm4 = vcmask 64512  }
  0xae   : > { %1953 = vmatprep.subr.bf16.mxu0 %v2522_v0  ;;  %1960 = vmatpush3.bf16.msra.mxu1 %v2176_v8  ;;  %v1894_v14 = vld [vmem:[%s3028_s5] ss:$0 sm:$0xff]  ;;  %v1889_v34 = vld [vmem:[#allocation17] ss:$0 sm:$0xff]  ;;  %v1206_v58 = vld [vmem:[%s2805_s12] sm:$0x3] }
  0xaf   : > { %1961 = vmatprep.subr.bf16.mxu1 %v2522_v0  ;;  %v2177_v21 = vld [vmem:[#allocation16] sm:$0xff]   ;;  %v1207_v59 = vunpack.c.0.s8 %v1206_v58  ;;  %s3088_s15 = sld [smem:[#allocation29_spill]]  ;;  %s1884_s18 = sshll.u32 %s2786_s30, 3 }
  0xb0   : > { %s3089_s12 = sld [smem:[#allocation38_spill]]  ;;  %s1660_s1 = scalar_lea.sflag [#allocation7], %s2786_s30 }
  0xb1   : > { %1954 = vmatpush3.bf16.msra.mxu0 %v2173_v2  ;;  %vm2895_vm5 = vcmp.eq.s32.totalorder %v1207_v59, 0  ;;  %s2527_s23 = smov [#allocation19]  }
  0xb2   : > { %1967 = vmatprep.subr.bf16.mxu0 %v2522_v0  ;;  %1962 = vmatpush3.bf16.msra.mxu1 %v2177_v21  ;;  %s2414_s16 = sshll.u32 %s2527_s23, 4  ;;  %s2415_s16 = int_to_ptr.vmem [resolvable:$false] %s2414_s16 }
  0xb3   : > { %1975 = vmatprep.subr.bf16.mxu1 %v2522_v0  ;;  %s2416_s21 = scalar_lea.vmem %s2415_s16, 256 }
  0xb4   : > { %1956 = vmatmul.mubr.msk.bf16.vlgmr.msra.gmra.mxu0 %vm643_vm1, %v618_v3 }
  0xb5   : > { %1968 = vmatpush3.bf16.msra.mxu0 %v2174_v4  ;;  %1971 = vmatprep.mubr.msk.bf16.mxu0 %vm2523_vm0, %v2522_v0  ;;  %s1913_s27 = sshll.u32 %s3088_s15, 7 }
  0xb6   : > { %1969 = vmatprep.subr.bf16.mxu0 %v2522_v0  ;;  %1964 = vmatmul.mubr.msk.bf16.vlgmr.msra.gmra.mxu1 %vm643_vm1, %v619_v22 }
  0xb7   : > { %1977 = vmatprep.mubr.msk.bf16.mxu1 %vm2523_vm0, %v2522_v0 }
  0xb9   : > { %1970 = vmatpush3.bf16.msra.mxu0 %v2175_v5 }
  0xba   : > { %1981 = vmatprep.subr.bf16.mxu0 %v2522_v0 }
  0xbc   : > { %1972 = vmatmul.mubr.msk.bf16.vlgmr.msra.gmra.mxu0 %vm643_vm1, %v923_v6 }
  0xbd   : > { %1983 = vmatprep.mubr.msk.bf16.mxu0 %vm2523_vm0, %v2522_v0 }
 0x174   : > { %v681_v9 = vpop.f32.mrf.mxu0 }
 0x175   : > { %v682_v10 = vadd.f32 %v1885_v7, %v681_v9 }
 0x176   : > { %v1957_v11 = vpop.f32.mrf.mxu0  ;;  %v747_v35 = vpop.f32.mrf.mxu1 }
 0x177   : > { %880 = vrot.lane.b32.xlu1 %v682_v10, %s2524_s24  ;;  %791 = vrot.lane.b32.xlu0 %v682_v10, %s2525_s28  ;;  %v748_v36 = vadd.f32 %v1889_v34, %v747_v35 }
 0x178   : > { %v684_v12 = vpop.f32.mrf.mxu0  ;;  %v1965_v37 = vpop.f32.mrf.mxu1 }
 0x179   : > { %v2870_v38 = vpack.c.bf16 %v748_v36, %v748_v36 }
 0x17a   : > { %v1958_v13 = vpop.f32.mrf.mxu0  ;;  %v750_v39 = vpop.f32.mrf.mxu1 }
 0x17b   : > { %837 = vrot.lane.b32.xlu0 %v682_v10, %s2526_s6  ;;  %789 = vst.msk [vmem:[#allocation4] sm:$0xf] %vm786_vm2, %v2870_v38 }
 0x17c   : > { %v985_v15 = vpop.f32.mrf.mxu0  ;;  %v1966_v40 = vpop.f32.mrf.mxu1 }
 0x17d   : > { %v986_v16 = vadd.f32 %v1894_v14, %v985_v15 }
 0x17e   : > { %v1973_v17 = vpop.f32.mrf.mxu0 }
 0x17f   : > { %v991_v18 = vpack.c.bf16 %v986_v16, %v986_v16 }
 0x180   : > { %v988_v19 = vpop.f32.mrf.mxu0 }
 0x181   : > { %993 = vst.msk [vmem:[#allocation2] sm:$0xf] %vm786_vm2, %v991_v18  ;;  %997 = vrot.lane.b32.xlu1 %v991_v18, %s2525_s28 }
 0x182   : > { %v1974_v20 = vpop.f32.mrf.mxu0  ;;  %v1263_v56 = vld [vmem:[#allocation4] sm:$0xf] }
 0x183   : > { %v1271_v57 = vsel %vm1024_vm3, %v1263_v56, 0 }
 0x185   : > { %1007 = vrot.lane.b32.xlu1 %v991_v18, %s2524_s24 }
 0x188   : > { %v1012_v32 = vld [vmem:[#allocation2] sm:$0xf] }
 0x199   : > { %753 = vxpose.xlu0.b32.start.end [1/1] (short) (narrow) %v682_v10, 8 }
 0x1c2   : > { %1002 = vrot.lane.b32.xlu0 %v991_v18, %s2526_s6 }
 0x1e9   : > { %v792_v23 = vpop.permute.xlu0 %791  ;;  %v881_v25 = vpop.permute.xlu1 %880 }
 0x1ea   : > { %794 = vxpose.xlu1.b32.start.end [1/1] (short) (narrow) %v792_v23, 8 }
 0x1ed   : > { %v838_v24 = vpop.permute.xlu0 %837 }
 0x1ee   : > { %840 = vxpose.xlu0.b32.start.end [1/1] (short) (narrow) %v838_v24, 8 }
 0x1f2   : > { %883 = vxpose.xlu0.b32.start.end [1/1] (short) (narrow) %v881_v25, 8 }
 0x1f3   : > { %v998_v26 = vpop.permute.xlu1 %997 }
 0x1f4   : > { %1001 = vst.msk [vmem:[#allocation2 + $0x4] sm:$0xf] %vm786_vm2, %v998_v26 }
 0x1f7   : > { %v1008_v27 = vpop.permute.xlu1 %1007 }
 0x1f8   : > { %1011 = vst.msk [vmem:[#allocation2 + $0xc] sm:$0xf] %vm786_vm2, %v1008_v27 }
 0x1fb   : > { %v1013_v49 = vld [vmem:[#allocation2 + $0x4] sm:$0xf] }
 0x1ff   : > { %v1015_v55 = vld [vmem:[#allocation2 + $0xc] sm:$0xf] }
 0x215   : > { %v769_v28 = vpop.trf.xlu0 }
 0x216   : > { %v785_v29 = vpack.c.bf16 %v769_v28, %v769_v28 }
 0x218   : > { %787 = vst.msk [vmem:[#allocation3] sm:$0xf] %vm786_vm2, %v785_v29 }
 0x21f   : > { %v1016_v30 = vld [vmem:[#allocation3] sm:$0xf] }
 0x220   : > { %v1026_v31 = vsel %vm1024_vm3, %v1016_v30, 0 }
 0x221   : > { %1976 = vmatpush3.bf16.msra.mxu1 %v1026_v31 }
 0x222   : > { %1987 = vmatprep.subr.bf16.mxu1 %v2522_v0 }
 0x224   : > { %1978 = vmatmul.mubr.msk.bf16.vlgmr.msra.gmra.mxu1 %vm1020_vm4, %v1012_v32 }
 0x225   : > { %1989 = vmatprep.mubr.msk.bf16.mxu1 %vm2523_vm0, %v2522_v0 }
 0x234   : > { %v1003_v33 = vpop.permute.xlu0 %1002 }
 0x235   : > { %1006 = vst.msk [vmem:[#allocation2 + $0x8] sm:$0xf] %vm786_vm2, %v1003_v33 }
 0x23c   : > { %v1014_v52 = vld [vmem:[#allocation2 + $0x8] sm:$0xf] }
 0x266   : > { %v810_v41 = vpop.trf.xlu1 }
 0x267   : > { %v826_v42 = vpack.c.bf16 %v810_v41, %v810_v41 }
 0x269   : > { %828 = vst.msk [vmem:[#allocation3 + $0x4] sm:$0xf] %vm786_vm2, %v826_v42 }
 0x26a   : > { %v856_v43 = vpop.trf.xlu0 }
 0x26b   : > { %v872_v44 = vpack.c.bf16 %v856_v43, %v856_v43 }
 0x26d   : > { %874 = vst.msk [vmem:[#allocation3 + $0x8] sm:$0xf] %vm786_vm2, %v872_v44 }
 0x26e   : > { %v899_v45 = vpop.trf.xlu0 }
 0x26f   : > { %v915_v46 = vpack.c.bf16 %v899_v45, %v899_v45 }
 0x270   : > { %v1017_v47 = vld [vmem:[#allocation3 + $0x4] sm:$0xf] }
 0x271   : > { %917 = vst.msk [vmem:[#allocation3 + $0xc] sm:$0xf] %vm786_vm2, %v915_v46  ;;  %v1072_v48 = vsel %vm1024_vm3, %v1017_v47, 0 }
 0x272   : > { %1982 = vmatpush3.bf16.msra.mxu0 %v1072_v48 }
 0x273   : > { %1993 = vmatprep.subr.bf16.mxu0 %v2522_v0 }
 0x274   : > { %v1018_v50 = vld [vmem:[#allocation3 + $0x8] sm:$0xf] }
 0x275   : > { %1984 = vmatmul.mubr.msk.bf16.vlgmr.msra.gmra.mxu0 %vm1020_vm4, %v1013_v49  ;;  %v1118_v51 = vsel %vm1024_vm3, %v1018_v50, 0 }
 0x276   : > { %1988 = vmatpush3.bf16.msra.mxu1 %v1118_v51  ;;  %1995 = vmatprep.mubr.msk.bf16.mxu0 %vm2523_vm0, %v2522_v0 }
 0x277   : > { %1999 = vmatprep.subr.bf16.mxu1 %v2522_v0 }
 0x278   : > { %v1019_v53 = vld [vmem:[#allocation3 + $0xc] sm:$0xf] }
 0x279   : > { %1990 = vmatmul.mubr.msk.bf16.vlgmr.msra.gmra.mxu1 %vm1020_vm4, %v1014_v52  ;;  %v1164_v54 = vsel %vm1024_vm3, %v1019_v53, 0 }
 0x27a   : > { %1994 = vmatpush3.bf16.msra.mxu0 %v1164_v54  ;;  %2001 = vmatprep.mubr.msk.bf16.mxu1 %vm2523_vm0, %v2522_v0 }
 0x27b   : > { %2005 = vmatprep.subr.bf16.mxu0 %v2522_v0  ;;  %2000 = vmatpush3.bf16.msra.mxu1 %v1271_v57 }
 0x27c   : > { %2011 = vmatprep.subr.bf16.mxu1 %v2522_v0 }
 0x27d   : > { %1996 = vmatmul.mubr.msk.bf16.vlgmr.msra.gmra.mxu0 %vm1020_vm4, %v1015_v55 }
 0x27e   : > { %2007 = vmatprep.mubr.msk.bf16.mxu0 %vm2523_vm0, %v2522_v0 }
 0x2e4   : > { %v1062_v61 = vpop.f32.mrf.mxu1 }
 0x2e5   : > { %v1211_v62 = vsel %vm2895_vm5, -1e+09, %v1062_v61 }
 0x2e6   : > { %v1979_v63 = vpop.f32.mrf.mxu1  ;;  %v1215_v1 = vsel %vm1020_vm4, %v1211_v62, -inf }
 0x2e7   : > { %1216 = vmax.xlane.f32.xlu0 %v1215_v1 }
 0x2e8   : > { %v1065_v2 = vpop.f32.mrf.mxu1 }
 0x2ea   : > { %v1980_v3 = vpop.f32.mrf.mxu1 }
 0x335   : > { %v1108_v4 = vpop.f32.mrf.mxu0 }
 0x336   : > { %v1212_v5 = vsel %vm2895_vm5, -1e+09, %v1108_v4 }
 0x337   : > { %v1985_v6 = vpop.f32.mrf.mxu0  ;;  %v1218_v7 = vsel %vm1020_vm4, %v1212_v5, -inf }
 0x338   : > { %1219 = vmax.xlane.f32.xlu1 %v1218_v7  ;;  %v1456_v6 = vld [vmem:[%s3033_s10 + $0x4] sm:$0xf] }
 0x339   : > { %v1111_v8 = vpop.f32.mrf.mxu0  ;;  %v1154_v9 = vpop.f32.mrf.mxu1  ;;  %v1509_v7 = vsel %vm1024_vm3, %v1456_v6, 0 }
 0x33a   : > { %v1213_v10 = vsel %vm2895_vm5, -1e+09, %v1154_v9  ;;  %v1457_v8 = vld [vmem:[%s3033_s10 + $0x8] sm:$0xf] }
 0x33b   : > { %v1986_v11 = vpop.f32.mrf.mxu0  ;;  %v1991_v12 = vpop.f32.mrf.mxu1  ;;  %v1221_v13 = vsel %vm1020_vm4, %v1213_v10, -inf }
 0x33c   : > { %1222 = vmax.xlane.f32.xlu1 %v1221_v13  ;;  %v1555_v11 = vsel %vm1024_vm3, %v1457_v8, 0 }
 0x33d   : > { %v1157_v14 = vpop.f32.mrf.mxu1  ;;  %v1200_v15 = vpop.f32.mrf.mxu0 }
 0x33e   : > { %v1214_v16 = vsel %vm2895_vm5, -1e+09, %v1200_v15  ;;  %v1458_v15 = vld [vmem:[%s3033_s10 + $0xc] sm:$0xf] }
 0x33f   : > { %v1992_v17 = vpop.f32.mrf.mxu1  ;;  %v1997_v18 = vpop.f32.mrf.mxu0  ;;  %v1224_v19 = vsel %vm1020_vm4, %v1214_v16, -inf }
 0x340   : > { %1225 = vmax.xlane.f32.xlu0 %v1224_v19  ;;  %v1601_v18 = vsel %vm1024_vm3, %v1458_v15, 0 }
 0x341   : > { %v1203_v20 = vpop.f32.mrf.mxu0 }
 0x343   : > { %v1998_v21 = vpop.f32.mrf.mxu0 }
 0x34d   : > { %832 = vrot.lane.b32.xlu1 %v2870_v38, %s2525_s28 }
 0x370   : > { %v1217_v22 = vpop.xlane.xlu0 %1216 }
 0x371   : > { %v1227_v23 = vsub.f32 %v1211_v62, %v1217_v22  ;;  %v1455_v62 = vld [vmem:[%s3033_s10] sm:$0xf] }
 0x372   : > { %v1463_v4 = vsel %vm1024_vm3, %v1455_v62, 0 }
 0x373   : > { %v1231_v24 = vmul.f32 1.442695, %v1227_v23 }
 0x375   : > { %2178 = vpow2.f32 %v1231_v24 }
 0x382   : > { %v2179_v25 = vpop.eup %2178 }
 0x383   : > { %v1239_v26 = vsel %vm1020_vm4, %v2179_v25, 0.0 }
 0x384   : > { %1240 = vadd.xlane.f32.xlu1 %v1239_v26 }
 0x3c1   : > { %v1220_v27 = vpop.xlane.xlu1 %1219 }
 0x3c2   : > { %v1228_v28 = vsub.f32 %v1212_v5, %v1220_v27 }
 0x3c4   : > { %v1233_v29 = vmul.f32 1.442695, %v1228_v28 }
 0x3c5   : > { %v1223_v30 = vpop.xlane.xlu1 %1222 }
 0x3c6   : > { %2180 = vpow2.f32 %v1233_v29  ;;  %v1229_v31 = vsub.f32 %v1213_v10, %v1223_v30 }
 0x3c8   : > { %v1235_v32 = vmul.f32 1.442695, %v1229_v31 }
 0x3c9   : > { %v833_v33 = vpop.permute.xlu1 %832  ;;  %v1226_v34 = vpop.xlane.xlu0 %1225 }
 0x3ca   : > { %2182 = vpow2.f32 %v1235_v32  ;;  %836 = vst.msk [vmem:[#allocation4 + $0x4] sm:$0xf] %vm786_vm2, %v833_v33  ;;  %v1230_v35 = vsub.f32 %v1214_v16, %v1226_v34 }
 0x3cc   : > { %v1237_v36 = vmul.f32 1.442695, %v1230_v35 }
 0x3ce   : > { %2184 = vpow2.f32 %v1237_v36 }
 0x3d1   : > { %v1264_v37 = vld [vmem:[#allocation4 + $0x4] sm:$0xf] }
 0x3d2   : > { %v1317_v39 = vsel %vm1024_vm3, %v1264_v37, 0 }
 0x3d3   : > { %v2181_v40 = vpop.eup %2180  ;;  %2006 = vmatpush3.bf16.msra.mxu0 %v1317_v39 }
 0x3d4   : > { %v1242_v41 = vsel %vm1020_vm4, %v2181_v40, 0.0  ;;  %2017 = vmatprep.subr.bf16.mxu0 %v2522_v0 }
 0x3d5   : > { %1243 = vadd.xlane.f32.xlu0 %v1242_v41 }
 0x3d7   : > { %v2183_v42 = vpop.eup %2182 }
 0x3d8   : > { %v1245_v43 = vsel %vm1020_vm4, %v2183_v42, 0.0 }
 0x3d9   : > { %1246 = vadd.xlane.f32.xlu1 %v1245_v43 }
 0x3db   : > { %v2185_v44 = vpop.eup %2184 }
 0x3dc   : > { %v1248_v45 = vsel %vm1020_vm4, %v2185_v44, 0.0 }
 0x3dd   : > { %1249 = vadd.xlane.f32.xlu0 %v1248_v45 }
 0x3ea   : > { %918 = vrot.lane.b32.xlu1 %v2870_v38, %s2524_s24  ;;  %s612_s24 = scalar_lea.vmem [#allocation19], %s1884_s18 }
 0x3eb   : > { %s1674_s28 = sshll.u32 %s612_s24, 4  ;;  %s1675_s28 = int_to_ptr.vmem [resolvable:$true] %s1674_s28 }
 0x3ec   : > { %s2410_s11 = scalar_lea.vmem %s1675_s28, 128  ;;  %p2417_p10 = scmp.lt.s32.totalorder %s1675_s28, %s2415_s16 }
 0x3ed   : > { %p2411_p4 = scmp.ne.s32.totalorder %s1675_s28, %s2410_s11  ;;  %p2418_p9 = scmp.lt.s32.totalorder %s2416_s21, %s2410_s11 }
 0x3ef   : > { %p2412_p1 = pnand %p2411_p4, %p2690_p7  ;;  %p2419_p0 = por %p2418_p9, %p2417_p10 }
 0x3f1   : > { %p2413_p12 = pneg %p2412_p1 }
 0x3f3   : > { %875 = vrot.lane.b32.xlu0 %v2870_v38, %s2526_s6  ;;  %s3091_s6 = sld [smem:[#allocation39_spill]]  ;;  %p2420_p2 = pnand %p2419_p0, %p2413_p12 }
 0x3f9   : > { %s2980_s14 = scalar_lea.hbm %s3091_s6, %s1913_s27 }
 0x40d   : > { %v1241_v46 = vpop.xlane.xlu1 %1240 }
 0x40e   : > { %2186 = vrcp.f32 %v1241_v46 }
 0x41b   : > { %v2187_v47 = vpop.eup %2186 }
 0x41c   : > { %v1255_v48 = vmul.f32 %v2187_v47, %v2179_v25 }
 0x41e   : > { %v1259_v49 = vpack.c.bf16 %v1255_v48, %v1255_v48 }
 0x420   : > { %2002 = vmatmul.mubr.msk.bf16.vlgmr.msra.gmra.mxu1 %vm1020_vm4, %v1259_v49  ;;  %v1911_v49 = vld [vmem:[%s3089_s12] ss:$0 sm:$0xff] }
 0x421   : > { %2013 = vmatprep.mubr.msk.bf16.mxu1 %vm2523_vm0, %v2522_v0 }
 0x45e   : > { %v1244_v50 = vpop.xlane.xlu0 %1243 }
 0x45f   : > { %2188 = vrcp.f32 %v1244_v50 }
 0x462   : > { %v1247_v51 = vpop.xlane.xlu1 %1246 }
 0x463   : > { %2190 = vrcp.f32 %v1247_v51 }
 0x466   : > { %v919_v52 = vpop.permute.xlu1 %918  ;;  %v1250_v53 = vpop.xlane.xlu0 %1249 }
 0x467   : > { %922 = vst.msk [vmem:[#allocation4 + $0xc] sm:$0xf] %vm786_vm2, %v919_v52  ;;  %2192 = vrcp.f32 %v1250_v53 }
 0x46a   : > { %v876_v38 = vpop.permute.xlu0 %875 }
 0x46b   : > { %879 = vst.msk [vmem:[#allocation4 + $0x8] sm:$0xf] %vm786_vm2, %v876_v38 }
 0x46c   : > { %v2189_v54 = vpop.eup %2188 }
 0x46d   : > { %v1256_v55 = vmul.f32 %v2189_v54, %v2181_v40 }
 0x46e   : > { %v1266_v56 = vld [vmem:[#allocation4 + $0xc] sm:$0xf] }
 0x46f   : > { %v1260_v57 = vpack.c.bf16 %v1256_v55, %v1256_v55  ;;  %v1409_v58 = vsel %vm1024_vm3, %v1266_v56, 0 }
 0x470   : > { %v2191_v59 = vpop.eup %2190 }
 0x471   : > { %2008 = vmatmul.mubr.msk.bf16.vlgmr.msra.gmra.mxu0 %vm1020_vm4, %v1260_v57  ;;  %v1257_v60 = vmul.f32 %v2191_v59, %v2183_v42 }
 0x472   : > { %2018 = vmatpush3.bf16.msra.mxu0 %v1409_v58  ;;  %v1265_v61 = vld [vmem:[#allocation4 + $0x8] sm:$0xf]  ;;  %2019 = vmatprep.mubr.msk.bf16.mxu0 %vm2523_vm0, %v2522_v0 }
 0x473   : > { %v1363_v63 = vsel %vm1024_vm3, %v1265_v61, 0  ;;  %2029 = vmatprep.subr.bf16.mxu0 %v2522_v0  ;;  %v1261_v2 = vpack.c.bf16 %v1257_v60, %v1257_v60 }
 0x474   : > { %v2193_v1 = vpop.eup %2192  ;;  %2012 = vmatpush3.bf16.msra.mxu1 %v1363_v63 }
 0x475   : > { %v1258_v3 = vmul.f32 %v2193_v1, %v2185_v44  ;;  %2023 = vmatprep.subr.bf16.mxu1 %v2522_v0 }
 0x477   : > { %2014 = vmatmul.mubr.msk.bf16.vlgmr.msra.gmra.mxu1 %vm1020_vm4, %v1261_v2  ;;  %v1262_v5 = vpack.c.bf16 %v1258_v3, %v1258_v3 }
 0x478   : > { %2024 = vmatpush3.bf16.msra.mxu1 %v1463_v4  ;;  %2025 = vmatprep.mubr.msk.bf16.mxu1 %vm2523_vm0, %v2522_v0 }
 0x479   : > { %2020 = vmatmul.mubr.msk.bf16.vlgmr.msra.gmra.mxu0 %vm1020_vm4, %v1262_v5  ;;  %2035 = vmatprep.subr.bf16.mxu1 %v2522_v0 }
 0x47a   : > { %2031 = vmatprep.mubr.msk.bf16.mxu0 %vm2523_vm0, %v2522_v0  ;;  %2030 = vmatpush3.bf16.msra.mxu0 %v1509_v7 }
 0x47b   : > { %2041 = vmatprep.subr.bf16.mxu0 %v2522_v0 }
 0x4e0   : > { %v1307_v9 = vpop.f32.mrf.mxu1 }
 0x4e1   : > { %v1451_v10 = vpack.c.bf16 %v1307_v9, %v1307_v9 }
 0x4e2   : > { %v2003_v12 = vpop.f32.mrf.mxu1 }
 0x4e3   : > { %2026 = vmatmul.mubr.msk.bf16.vlgmr.msra.gmra.mxu1 %vm1020_vm4, %v1451_v10 }
 0x4e4   : > { %v1310_v13 = vpop.f32.mrf.mxu1  ;;  %2036 = vmatpush3.bf16.msra.mxu1 %v1555_v11  ;;  %2037 = vmatprep.mubr.msk.bf16.mxu1 %vm2523_vm0, %v2522_v0 }
 0x4e6   : > { %v2004_v14 = vpop.f32.mrf.mxu1 }
 0x531   : > { %v1353_v16 = vpop.f32.mrf.mxu0 }
 0x532   : > { %v1452_v17 = vpack.c.bf16 %v1353_v16, %v1353_v16 }
 0x533   : > { %v2009_v19 = vpop.f32.mrf.mxu0 }
 0x534   : > { %2032 = vmatmul.mubr.msk.bf16.vlgmr.msra.gmra.mxu0 %vm1020_vm4, %v1452_v17 }
 0x535   : > { %v1356_v20 = vpop.f32.mrf.mxu0  ;;  %2042 = vmatpush3.bf16.msra.mxu0 %v1601_v18  ;;  %2043 = vmatprep.mubr.msk.bf16.mxu0 %vm2523_vm0, %v2522_v0 }
 0x537   : > { %v2010_v21 = vpop.f32.mrf.mxu0  ;;  %v1399_v22 = vpop.f32.mrf.mxu1 }
 0x538   : > { %v1453_v23 = vpack.c.bf16 %v1399_v22, %v1399_v22 }
 0x539   : > { %v2015_v24 = vpop.f32.mrf.mxu1  ;;  %v1445_v25 = vpop.f32.mrf.mxu0 }
 0x53a   : > { %v1454_v26 = vpack.c.bf16 %v1445_v25, %v1445_v25  ;;  %2038 = vmatmul.mubr.msk.bf16.vlgmr.msra.gmra.mxu1 %vm1020_vm4, %v1453_v23 }
 0x53b   : > { %v1402_v27 = vpop.f32.mrf.mxu1  ;;  %v2021_v28 = vpop.f32.mrf.mxu0 }
 0x53c   : > { %2044 = vmatmul.mubr.msk.bf16.vlgmr.msra.gmra.mxu0 %vm1020_vm4, %v1454_v26 }
 0x53d   : > { %v2016_v29 = vpop.f32.mrf.mxu1  ;;  %v1448_v30 = vpop.f32.mrf.mxu0 }
 0x53f   : > { %v2022_v31 = vpop.f32.mrf.mxu0 }
 0x5a3   : > { %v1499_v32 = vpop.f32.mrf.mxu1 }
 0x5a4   : > { %v1643_v40 = vsel %vm643_vm1, %v1499_v32, 0.0 }
 0x5a5   : > { %v2027_v33 = vpop.f32.mrf.mxu1 }
 0x5a7   : > { %v1502_v34 = vpop.f32.mrf.mxu1 }
 0x5a9   : > { %v2028_v0 = vpop.f32.mrf.mxu1 }
 0x5f4   : > { %v1545_v35 = vpop.f32.mrf.mxu0 }
 0x5f5   : > { %v1644_v37 = vsel %vm643_vm1, %v1545_v35, 0.0 }
 0x5f6   : > { %v2033_v36 = vpop.f32.mrf.mxu0  ;;  %v1645_v41 = vadd.f32 %v1644_v37, %v1643_v40 }
 0x5f8   : > { %v1548_v39 = vpop.f32.mrf.mxu0 }
 0x5fa   : > { %v2034_v42 = vpop.f32.mrf.mxu0  ;;  %v1591_v43 = vpop.f32.mrf.mxu1 }
 0x5fb   : > { %v1646_v44 = vsel %vm643_vm1, %v1591_v43, 0.0 }
 0x5fc   : > { %v1647_v45 = vadd.f32 %v1646_v44, %v1645_v41  ;;  %v2039_v46 = vpop.f32.mrf.mxu1  ;;  %v1637_v47 = vpop.f32.mrf.mxu0 }
 0x5fd   : > { %v1648_v48 = vsel %vm643_vm1, %v1637_v47, 0.0 }
 0x5fe   : > { %v1649_v50 = vadd.f32 %v1648_v48, %v1647_v45  ;;  %v1594_v51 = vpop.f32.mrf.mxu1  ;;  %v2045_v52 = vpop.f32.mrf.mxu0 }
 0x600   : > { %v1657_v53 = vadd.f32 %v1911_v49, %v1649_v50  ;;  %v2040_v38 = vpop.f32.mrf.mxu1  ;;  %v1640_v54 = vpop.f32.mrf.mxu0 }
 0x602   : > { %v2046_v55 = vpop.f32.mrf.mxu0  ;;  %1658 = vst.msk [vmem:[%s612_s24] sm:$0xff] %vm643_vm1, %v1657_v53 }
 0x603   : > { %2423 = shalt.err (!%p2420_p2)
}
 0x604   : > { %s2424_s13 = scalar_lea.hbm %s2980_s14, 128  ;;  %s2428_s15 = scalar_lea.hbm %s3091_s6, 256 }
 0x605   : > { %p2425_p8 = scmp.ne.s32.totalorder %s2980_s14, %s2424_s13  ;;  %p2429_p11 = scmp.lt.s32.totalorder %s2980_s14, %s3091_s6 }
 0x606   : > { %p2430_p3 = scmp.lt.s32.totalorder %s2428_s15, %s2424_s13 }
 0x607   : > { %p2426_p13 = pnand %p2425_p8, %p2690_p7 }
 0x608   : > { %p2431_p6 = por %p2430_p3, %p2429_p11 }
 0x609   : > { %p2427_p5 = pneg %p2426_p13 }
 0x60b   : > { %p2432_p4 = pnand %p2431_p6, %p2427_p5 }
 0x60d   : > { %2435 = shalt.err (!%p2432_p4)
}
 0x60e   : > { %2071 = dma.vmem_to_hbm [thread:$0]  (%p2690_p7), %s1675_s28, 128, %s2980_s14, %s1660_s1  }
 0x60f PF: > { %s3092_s19 = sld [smem:[#allocation27_spill]]  ;;  %p3095_p12 = scmp.ge.s32.totalorder %s2510_s26, 2 }
 0x610   : > { %s3093_s12 = sld [smem:[#allocation30_spill]] }
 0x615   : > { %s1686_s27 = sand.u32 1, %s3092_s19  }
 0x616   : > { %p3094_p1 = scmp.ne.s32.totalorder %s3093_s12, 0  ;;  %s1687_s24 = scalar_lea.sflag [#allocation7], %s1686_s27 }
 0x618   : > { %p2100_p10 = pnand %p3095_p12, %p3094_p1 }
 0x61a   : > { %p2101_p9 = pneg %p2100_p10 }
 0x61c   : > { %2485 = dma.done.wait (%p2101_p9), %s1687_s24, 128  }
 0x61d   : > { %2487 = vsyncadd (%p2101_p9), %s1687_s24, 4294967168  ;;  %s36_s26 = sadd.s32 1, %s2510_s26   ;;  %s3096_s4 = sld [smem:[#allocation28_spill]] }
 0x61e   : > { %p33_p0 = scmp.ge.s32.totalorder %s36_s26, 4   ;;  %s3097_s23 = sld [smem:[#allocation33_spill]] }
 0x61f   : > { %s3098_s29 = sld [smem:[#allocation31_spill]]  ;;  %s3099_s21 = smov %s2494_s22 }
 0x620   : > { %s3101_s24 = smov %s2506_s25 }
 0x621   :  { %35 = sbr.rel (!%p33_p0) target bundleno = 19 (0x13), region = 179 }
 0x623   : > { %s3100_s22 = smov %s3096_s4 }
 0x625   : > { %s3102_s25 = smov %s3098_s29 }
 0x626   :  { %1692 = vsyncpa [#allocation6], 1 }
 0x627   :  { %1694 = vsyncpa [#allocation6 + $0x1], 1 }
 0x628   :  { %1695 = vsyncpa [#allocation9], 1 }
 0x629   :  { %1697 = vsyncpa [#allocation9 + $0x1], 1 }
 0x62a   :  { %1698 = vsyncpa [#allocation12], 1 }
 0x62b   :  { %1700 = vsyncpa [#allocation12 + $0x1], 1 }
 0x62c   :  { %1701 = vsyncpa [#allocation15], 1 }
 0x62d   :  { %1702 = vsyncpa [#allocation18], 1 }
 0x62e   :  { %1703 = vsyncpa [#allocation7], 1 }
 0x62f   :  { %1705 = vsyncpa [#allocation7 + $0x1], 1 }

</bundles_post_ra>
